<compile_context>
chip_gen: v6e
topology: v6e:2x2x1
jax: 0.10.0
libtpu: 0.0.40
codegen_flags: <defaults>
</compile_context>

<pallas_src>
import math
import functools

import jax
import jax.numpy as jnp
from jax import lax
from jax.experimental import pallas as pl
from jax.experimental.pallas import tpu as pltpu


def _perceiver_attn_kernel(x_ref, lat_ref,
                           g1_ref, b1_ref, g2_ref, b2_ref,
                           wq_ref, wk_ref, wv_ref, wo_ref,
                           o_ref,
                           *, heads, dim_head, batch, n1, n2):
    eps = 1e-5                      # torch.nn.LayerNorm default

    x = x_ref[...]                  # (b*n1, D) f32
    lat = lat_ref[...]              # (b*n2, D) f32

    def layer_norm(t, g, b):
        mu = jnp.mean(t, axis=-1, keepdims=True)
        var = jnp.mean((t - mu) * (t - mu), axis=-1, keepdims=True)
        return (t - mu) * lax.rsqrt(var + eps) * g + b

    xn = layer_norm(x, g1_ref[...], b1_ref[...])        # (b*n1, D) f32
    latn = layer_norm(lat, g2_ref[...], b2_ref[...])    # (b*n2, D) f32

    xn_bf = xn.astype(jnp.bfloat16)
    latn_bf = latn.astype(jnp.bfloat16)

    # Projections with batch folded into the M dimension.  K/V of the
    # concatenated kv_input are obtained as two matmuls (no concat, no scratch).
    q = jnp.dot(latn_bf, wq_ref[...], preferred_element_type=jnp.float32)   # (b*n2, inner)
    kx = jnp.dot(xn_bf, wk_ref[...], preferred_element_type=jnp.float32)    # (b*n1, inner)
    kl = jnp.dot(latn_bf, wk_ref[...], preferred_element_type=jnp.float32)  # (b*n2, inner)
    vx = jnp.dot(xn_bf, wv_ref[...], preferred_element_type=jnp.float32)    # (b*n1, inner)
    vl = jnp.dot(latn_bf, wv_ref[...], preferred_element_type=jnp.float32)  # (b*n2, inner)

    # Apply the attention scale once on q; (q*s)@(k*s)^T == (q/sqrt(dh))@k^T.
    q_bf = (q * (1.0 / math.sqrt(dim_head))).astype(jnp.bfloat16)
    kx_bf = kx.astype(jnp.bfloat16)
    kl_bf = kl.astype(jnp.bfloat16)
    vx_bf = vx.astype(jnp.bfloat16)
    vl_bf = vl.astype(jnp.bfloat16)

    # Static unroll over (batch, heads); both are tiny here.
    for bi in range(batch):
        q_rows = slice(bi * n2, (bi + 1) * n2)
        x_rows = slice(bi * n1, (bi + 1) * n1)
        out_acc = jnp.zeros((n2, o_ref.shape[-1]), jnp.float32)
        for h in range(heads):
            lo = h * dim_head
            hi = lo + dim_head
            qh = q_bf[q_rows, lo:hi]         # (n2, dh)  bf16
            kxh = kx_bf[x_rows, lo:hi]       # (n1, dh)  bf16
            klh = kl_bf[q_rows, lo:hi]       # (n2, dh)  bf16
            vxh = vx_bf[x_rows, lo:hi]       # (n1, dh)  bf16
            vlh = vl_bf[q_rows, lo:hi]       # (n2, dh)  bf16

            # Scores against the x-part and latent-part of kv_input; contract
            # the LAST axis of both operands (MXU absorbs the transpose).
            sx = lax.dot_general(qh, kxh, (((1,), (1,)), ((), ())),
                                 preferred_element_type=jnp.float32)   # (n2, n1)
            sl = lax.dot_general(qh, klh, (((1,), (1,)), ((), ())),
                                 preferred_element_type=jnp.float32)   # (n2, n2)

            m = jnp.maximum(jnp.max(sx, axis=-1, keepdims=True),
                            jnp.max(sl, axis=-1, keepdims=True))       # (n2, 1)
            px = jnp.exp(sx - m)
            pl_lat = jnp.exp(sl - m)
            denom = (jnp.sum(px, axis=-1, keepdims=True)
                     + jnp.sum(pl_lat, axis=-1, keepdims=True))        # (n2, 1)

            # Deferred softmax normalization: multiply the small (n2, dh) tile.
            oh = (jnp.dot(px.astype(jnp.bfloat16), vxh,
                          preferred_element_type=jnp.float32)
                  + jnp.dot(pl_lat.astype(jnp.bfloat16), vlh,
                            preferred_element_type=jnp.float32))       # (n2, dh)
            oh = oh * pl.reciprocal(denom, approx=True)

            # Fold the output projection per head (no attn scratch round trip).
            out_acc = out_acc + jnp.dot(oh.astype(jnp.bfloat16),
                                        wo_ref[lo:hi, :],
                                        preferred_element_type=jnp.float32)

        o_ref[q_rows, :] = out_acc.astype(o_ref.dtype)


def prepare_params(params):
    """One-time conversion of the matmul weights to bf16 (do at load time)."""
    g1, b1, g2, b2, wq, wk, wv, wo = params
    return (g1, b1, g2, b2,
            wq.astype(jnp.bfloat16), wk.astype(jnp.bfloat16),
            wv.astype(jnp.bfloat16), wo.astype(jnp.bfloat16))


def perceiver_attention(x, latents, params, *, heads, dim_head):
    """x: (b, n1, D) f32, latents: (b, n2, D) f32 -> (b, n2, D) f32."""
    b, n1, d = x.shape
    _, n2, _ = latents.shape
    inner = heads * dim_head

    g1, b1, g2, b2, wq, wk, wv, wo = params   # linear weights are (in, out) = W^T

    # Fold batch into the row dim outside the kernel (contiguous reshape).
    x2 = x.reshape(b * n1, d)
    lat2 = latents.reshape(b * n2, d)

    kernel = functools.partial(_perceiver_attn_kernel, heads=heads,
                               dim_head=dim_head, batch=b, n1=n1, n2=n2)

    full = lambda shape: pl.BlockSpec(shape, lambda i: (0, 0))

    out = pl.pallas_call(
        kernel,
        out_shape=jax.ShapeDtypeStruct((b * n2, d), jnp.float32),
        grid_spec=pltpu.PrefetchScalarGridSpec(
            num_scalar_prefetch=0,
            grid=(1,),                       # batch folded: single grid step
            in_specs=[
                full((b * n1, d)),           # x (normed inside)
                full((b * n2, d)),           # latents
                full((1, d)), full((1, d)),  # norm1 gamma/beta
                full((1, d)), full((1, d)),  # norm2 gamma/beta
                full((d, inner)),            # Wq^T (bf16)
                full((d, inner)),            # Wk^T (bf16)
                full((d, inner)),            # Wv^T (bf16)
                full((inner, d)),            # Wo^T (bf16)
            ],
            out_specs=full((b * n2, d)),
        ),
        compiler_params=pltpu.CompilerParams(dimension_semantics=("arbitrary",)),
    )(x2, lat2, g1, b1, g2, b2, wq, wk, wv, wo)

    return out.reshape(b, n2, d)


def _reference(x, latents, params, *, heads, dim_head):
    """Pure-JAX f32 reference matching the PyTorch module semantics."""
    g1, b1, g2, b2, wq, wk, wv, wo = params
    eps = 1e-5

    def ln(t, g, b):
        mu = jnp.mean(t, axis=-1, keepdims=True)
        var = jnp.mean((t - mu) ** 2, axis=-1, keepdims=True)
        return (t - mu) / jnp.sqrt(var + eps) * g + b

    xn = ln(x, g1[0], b1[0])
    latn = ln(latents, g2[0], b2[0])
    bsz, n2, _ = latents.shape
    q = latn @ wq
    kv_in = jnp.concatenate([xn, latn], axis=-2)
    k = kv_in @ wk
    v = kv_in @ wv

    def split_heads(t):
        b_, l_, _ = t.shape
        return jnp.transpose(t.reshape(b_, l_, heads, dim_head), (0, 2, 1, 3))

    qh, kh, vh = split_heads(q), split_heads(k), split_heads(v)
    scale = 1.0 / math.sqrt(math.sqrt(dim_head))
    w = (qh * scale) @ jnp.swapaxes(kh * scale, -2, -1)
    w = jax.nn.softmax(w.astype(jnp.float32), axis=-1)
    out = w @ vh
    out = jnp.transpose(out, (0, 2, 1, 3)).reshape(bsz, n2, heads * dim_head)
    return out @ wo


if __name__ == "__main__":
    # Small shapes consistent with the module's forward contract.
    B, N1, N2 = 2, 16, 8
    DIM, HEADS, DIM_HEAD = 32, 2, 16
    INNER = HEADS * DIM_HEAD

    key = jax.random.PRNGKey(0)
    ks = jax.random.split(key, 10)

    x = jax.random.normal(ks[0], (B, N1, DIM), dtype=jnp.float32)
    latents = jax.random.normal(ks[1], (B, N2, DIM), dtype=jnp.float32)

    # LayerNorm affine (non-trivial to exercise the affine path) + Linear
    # weights (no biases).  PyTorch nn.Linear stores (out, in); we keep
    # (in, out) = W^T so y = x @ W^T.
    g1 = 1.0 + 0.1 * jax.random.normal(ks[6], (1, DIM), dtype=jnp.float32)
    b1 = 0.1 * jax.random.normal(ks[7], (1, DIM), dtype=jnp.float32)
    g2 = 1.0 + 0.1 * jax.random.normal(ks[8], (1, DIM), dtype=jnp.float32)
    b2 = 0.1 * jax.random.normal(ks[9], (1, DIM), dtype=jnp.float32)
    wq = 0.05 * jax.random.normal(ks[2], (DIM, INNER), dtype=jnp.float32)
    wk = 0.05 * jax.random.normal(ks[3], (DIM, INNER), dtype=jnp.float32)
    wv = 0.05 * jax.random.normal(ks[4], (DIM, INNER), dtype=jnp.float32)
    wo = 0.05 * jax.random.normal(ks[5], (INNER, DIM), dtype=jnp.float32)

    params_f32 = (g1, b1, g2, b2, wq, wk, wv, wo)
    params_krn = prepare_params(params_f32)   # bf16 weights, converted once

    out = perceiver_attention(x, latents, params_krn,
                              heads=HEADS, dim_head=DIM_HEAD)
    out = jax.block_until_ready(out)

    ref = _reference(x, latents, params_f32, heads=HEADS, dim_head=DIM_HEAD)
    assert out.shape == (B, N2, DIM), out.shape
    err = float(jnp.max(jnp.abs(out - ref)))
    # bf16 matmul operands (f32 accumulation) + approx softmax reciprocal vs
    # the f32 reference: ~1e-3 abs error at these magnitudes.
    assert err < 2e-2, err

    print("KERNEL_OK")
</pallas_src>

<mosaic_0001>
module attributes {stable_mosaic.version = 11 : i64} {
  func.func @_perceiver_attn_kernel(%arg0: i32, %arg1: memref<32x32xf32, #tpu.memory_space<vmem>>, %arg2: memref<16x32xf32, #tpu.memory_space<vmem>>, %arg3: memref<1x32xf32, #tpu.memory_space<vmem>>, %arg4: memref<1x32xf32, #tpu.memory_space<vmem>>, %arg5: memref<1x32xf32, #tpu.memory_space<vmem>>, %arg6: memref<1x32xf32, #tpu.memory_space<vmem>>, %arg7: memref<32x32xbf16, #tpu.memory_space<vmem>>, %arg8: memref<32x32xbf16, #tpu.memory_space<vmem>>, %arg9: memref<32x32xbf16, #tpu.memory_space<vmem>>, %arg10: memref<32x32xbf16, #tpu.memory_space<vmem>>, %arg11: memref<16x32xf32, #tpu.memory_space<vmem>>) attributes {dimension_semantics = [#tpu.dimension_semantics<arbitrary>], iteration_bounds = array<i64: 1>, scalar_prefetch = 0 : i64, scratch_operands = 0 : i64, tpu.core_type = #tpu.core_type<tc>, window_params = [{pipeline_mode = #tpu.pipeline_mode<synchronous>, transform_indices = @transform_0, window_bounds = array<i64: 32, 32>}, {pipeline_mode = #tpu.pipeline_mode<synchronous>, transform_indices = @transform_1, window_bounds = array<i64: 16, 32>}, {pipeline_mode = #tpu.pipeline_mode<synchronous>, transform_indices = @transform_2, window_bounds = array<i64: 1, 32>}, {pipeline_mode = #tpu.pipeline_mode<synchronous>, transform_indices = @transform_3, window_bounds = array<i64: 1, 32>}, {pipeline_mode = #tpu.pipeline_mode<synchronous>, transform_indices = @transform_4, window_bounds = array<i64: 1, 32>}, {pipeline_mode = #tpu.pipeline_mode<synchronous>, transform_indices = @transform_5, window_bounds = array<i64: 1, 32>}, {pipeline_mode = #tpu.pipeline_mode<synchronous>, transform_indices = @transform_6, window_bounds = array<i64: 32, 32>}, {pipeline_mode = #tpu.pipeline_mode<synchronous>, transform_indices = @transform_7, window_bounds = array<i64: 32, 32>}, {pipeline_mode = #tpu.pipeline_mode<synchronous>, transform_indices = @transform_8, window_bounds = array<i64: 32, 32>}, {pipeline_mode = #tpu.pipeline_mode<synchronous>, transform_indices = @transform_9, window_bounds = array<i64: 32, 32>}, {pipeline_mode = #tpu.pipeline_mode<synchronous>, transform_indices = @transform_10, window_bounds = array<i64: 16, 32>}]} {
    %c0 = arith.constant 0 : index
    %c0_0 = arith.constant 0 : index
    %0 = vector.load %arg1[%c0, %c0_0] : memref<32x32xf32, #tpu.memory_space<vmem>>, vector<32x32xf32>
    %c0_1 = arith.constant 0 : index
    %c0_2 = arith.constant 0 : index
    %1 = vector.load %arg2[%c0_1, %c0_2] : memref<16x32xf32, #tpu.memory_space<vmem>>, vector<16x32xf32>
    %c0_3 = arith.constant 0 : index
    %c0_4 = arith.constant 0 : index
    %2 = vector.load %arg3[%c0_3, %c0_4] : memref<1x32xf32, #tpu.memory_space<vmem>>, vector<1x32xf32>
    %c0_5 = arith.constant 0 : index
    %c0_6 = arith.constant 0 : index
    %3 = vector.load %arg4[%c0_5, %c0_6] : memref<1x32xf32, #tpu.memory_space<vmem>>, vector<1x32xf32>
    %cst = arith.constant dense<0.000000e+00> : vector<32xf32>
    %4 = vector.multi_reduction <add>, %0, %cst [1] : vector<32x32xf32> to vector<32xf32>
    %5 = vector.shape_cast %4 : vector<32xf32> to vector<32x1xf32>
    %cst_7 = arith.constant 3.200000e+01 : f32
    %6 = vector.broadcast %cst_7 : f32 to vector<32x1xf32>
    %7 = arith.divf %5, %6 : vector<32x1xf32>
    %8 = vector.broadcast %7 : vector<32x1xf32> to vector<32x32xf32>
    %9 = arith.subf %0, %8 : vector<32x32xf32>
    %10 = vector.broadcast %7 : vector<32x1xf32> to vector<32x32xf32>
    %11 = arith.subf %0, %10 : vector<32x32xf32>
    %12 = arith.mulf %9, %11 : vector<32x32xf32>
    %cst_8 = arith.constant dense<0.000000e+00> : vector<32xf32>
    %13 = vector.multi_reduction <add>, %12, %cst_8 [1] : vector<32x32xf32> to vector<32xf32>
    %14 = vector.shape_cast %13 : vector<32xf32> to vector<32x1xf32>
    %cst_9 = arith.constant 3.200000e+01 : f32
    %15 = vector.broadcast %cst_9 : f32 to vector<32x1xf32>
    %16 = arith.divf %14, %15 : vector<32x1xf32>
    %17 = vector.broadcast %7 : vector<32x1xf32> to vector<32x32xf32>
    %18 = arith.subf %0, %17 : vector<32x32xf32>
    %cst_10 = arith.constant 9.99999974E-6 : f32
    %19 = vector.broadcast %cst_10 : f32 to vector<32x1xf32>
    %20 = arith.addf %16, %19 : vector<32x1xf32>
    %21 = math.rsqrt %20 : vector<32x1xf32>
    %22 = vector.broadcast %21 : vector<32x1xf32> to vector<32x32xf32>
    %23 = arith.mulf %18, %22 : vector<32x32xf32>
    %24 = vector.broadcast %2 : vector<1x32xf32> to vector<32x32xf32>
    %25 = arith.mulf %23, %24 : vector<32x32xf32>
    %26 = vector.broadcast %3 : vector<1x32xf32> to vector<32x32xf32>
    %27 = arith.addf %25, %26 : vector<32x32xf32>
    %c0_11 = arith.constant 0 : index
    %c0_12 = arith.constant 0 : index
    %28 = vector.load %arg5[%c0_11, %c0_12] : memref<1x32xf32, #tpu.memory_space<vmem>>, vector<1x32xf32>
    %c0_13 = arith.constant 0 : index
    %c0_14 = arith.constant 0 : index
    %29 = vector.load %arg6[%c0_13, %c0_14] : memref<1x32xf32, #tpu.memory_space<vmem>>, vector<1x32xf32>
    %cst_15 = arith.constant dense<0.000000e+00> : vector<16xf32>
    %30 = vector.multi_reduction <add>, %1, %cst_15 [1] : vector<16x32xf32> to vector<16xf32>
    %31 = vector.shape_cast %30 : vector<16xf32> to vector<16x1xf32>
    %cst_16 = arith.constant 3.200000e+01 : f32
    %32 = vector.broadcast %cst_16 : f32 to vector<16x1xf32>
    %33 = arith.divf %31, %32 : vector<16x1xf32>
    %34 = vector.broadcast %33 : vector<16x1xf32> to vector<16x32xf32>
    %35 = arith.subf %1, %34 : vector<16x32xf32>
    %36 = vector.broadcast %33 : vector<16x1xf32> to vector<16x32xf32>
    %37 = arith.subf %1, %36 : vector<16x32xf32>
    %38 = arith.mulf %35, %37 : vector<16x32xf32>
    %cst_17 = arith.constant dense<0.000000e+00> : vector<16xf32>
    %39 = vector.multi_reduction <add>, %38, %cst_17 [1] : vector<16x32xf32> to vector<16xf32>
    %40 = vector.shape_cast %39 : vector<16xf32> to vector<16x1xf32>
    %cst_18 = arith.constant 3.200000e+01 : f32
    %41 = vector.broadcast %cst_18 : f32 to vector<16x1xf32>
    %42 = arith.divf %40, %41 : vector<16x1xf32>
    %43 = vector.broadcast %33 : vector<16x1xf32> to vector<16x32xf32>
    %44 = arith.subf %1, %43 : vector<16x32xf32>
    %cst_19 = arith.constant 9.99999974E-6 : f32
    %45 = vector.broadcast %cst_19 : f32 to vector<16x1xf32>
    %46 = arith.addf %42, %45 : vector<16x1xf32>
    %47 = math.rsqrt %46 : vector<16x1xf32>
    %48 = vector.broadcast %47 : vector<16x1xf32> to vector<16x32xf32>
    %49 = arith.mulf %44, %48 : vector<16x32xf32>
    %50 = vector.broadcast %28 : vector<1x32xf32> to vector<16x32xf32>
    %51 = arith.mulf %49, %50 : vector<16x32xf32>
    %52 = vector.broadcast %29 : vector<1x32xf32> to vector<16x32xf32>
    %53 = arith.addf %51, %52 : vector<16x32xf32>
    %54 = arith.truncf %27 : vector<32x32xf32> to vector<32x32xbf16>
    %55 = arith.truncf %53 : vector<16x32xf32> to vector<16x32xbf16>
    %c0_20 = arith.constant 0 : index
    %c0_21 = arith.constant 0 : index
    %56 = vector.load %arg7[%c0_20, %c0_21] : memref<32x32xbf16, #tpu.memory_space<vmem>>, vector<32x32xbf16>
    %cst_22 = arith.constant dense<0.000000e+00> : vector<16x32xf32>
    %57 = tpu.matmul %55, %56, %cst_22 {dimension_numbers = #tpu.dot_dimension_numbers<[1], [0], [0], [1], [0, 0, 1, 1], [], []>} : vector<16x32xbf16>, vector<32x32xbf16>, vector<16x32xf32> -> vector<16x32xf32>
    %c0_23 = arith.constant 0 : index
    %c0_24 = arith.constant 0 : index
    %58 = vector.load %arg8[%c0_23, %c0_24] : memref<32x32xbf16, #tpu.memory_space<vmem>>, vector<32x32xbf16>
    %cst_25 = arith.constant dense<0.000000e+00> : vector<32x32xf32>
    %59 = tpu.matmul %54, %58, %cst_25 {dimension_numbers = #tpu.dot_dimension_numbers<[1], [0], [0], [1], [0, 0, 1, 1], [], []>} : vector<32x32xbf16>, vector<32x32xbf16>, vector<32x32xf32> -> vector<32x32xf32>
    %c0_26 = arith.constant 0 : index
    %c0_27 = arith.constant 0 : index
    %60 = vector.load %arg8[%c0_26, %c0_27] : memref<32x32xbf16, #tpu.memory_space<vmem>>, vector<32x32xbf16>
    %cst_28 = arith.constant dense<0.000000e+00> : vector<16x32xf32>
    %61 = tpu.matmul %55, %60, %cst_28 {dimension_numbers = #tpu.dot_dimension_numbers<[1], [0], [0], [1], [0, 0, 1, 1], [], []>} : vector<16x32xbf16>, vector<32x32xbf16>, vector<16x32xf32> -> vector<16x32xf32>
    %c0_29 = arith.constant 0 : index
    %c0_30 = arith.constant 0 : index
    %62 = vector.load %arg9[%c0_29, %c0_30] : memref<32x32xbf16, #tpu.memory_space<vmem>>, vector<32x32xbf16>
    %cst_31 = arith.constant dense<0.000000e+00> : vector<32x32xf32>
    %63 = tpu.matmul %54, %62, %cst_31 {dimension_numbers = #tpu.dot_dimension_numbers<[1], [0], [0], [1], [0, 0, 1, 1], [], []>} : vector<32x32xbf16>, vector<32x32xbf16>, vector<32x32xf32> -> vector<32x32xf32>
    %c0_32 = arith.constant 0 : index
    %c0_33 = arith.constant 0 : index
    %64 = vector.load %arg9[%c0_32, %c0_33] : memref<32x32xbf16, #tpu.memory_space<vmem>>, vector<32x32xbf16>
    %cst_34 = arith.constant dense<0.000000e+00> : vector<16x32xf32>
    %65 = tpu.matmul %55, %64, %cst_34 {dimension_numbers = #tpu.dot_dimension_numbers<[1], [0], [0], [1], [0, 0, 1, 1], [], []>} : vector<16x32xbf16>, vector<32x32xbf16>, vector<16x32xf32> -> vector<16x32xf32>
    %cst_35 = arith.constant 2.500000e-01 : f32
    %66 = vector.broadcast %cst_35 : f32 to vector<16x32xf32>
    %67 = arith.mulf %57, %66 : vector<16x32xf32>
    %68 = arith.truncf %67 : vector<16x32xf32> to vector<16x32xbf16>
    %69 = arith.truncf %59 : vector<32x32xf32> to vector<32x32xbf16>
    %70 = arith.truncf %61 : vector<16x32xf32> to vector<16x32xbf16>
    %71 = arith.truncf %63 : vector<32x32xf32> to vector<32x32xbf16>
    %72 = arith.truncf %65 : vector<16x32xf32> to vector<16x32xbf16>
    %cst_36 = arith.constant 0.000000e+00 : f32
    %73 = vector.broadcast %cst_36 : f32 to vector<8x32xf32>
    %74 = vector.extract_strided_slice %68 {offsets = [0, 0], sizes = [8, 16], strides = [1, 1]} : vector<16x32xbf16> to vector<8x16xbf16>
    %75 = vector.extract_strided_slice %69 {offsets = [0, 0], sizes = [16, 16], strides = [1, 1]} : vector<32x32xbf16> to vector<16x16xbf16>
    %76 = vector.extract_strided_slice %70 {offsets = [0, 0], sizes = [8, 16], strides = [1, 1]} : vector<16x32xbf16> to vector<8x16xbf16>
    %77 = vector.extract_strided_slice %71 {offsets = [0, 0], sizes = [16, 16], strides = [1, 1]} : vector<32x32xbf16> to vector<16x16xbf16>
    %78 = vector.extract_strided_slice %72 {offsets = [0, 0], sizes = [8, 16], strides = [1, 1]} : vector<16x32xbf16> to vector<8x16xbf16>
    %cst_37 = arith.constant dense<0.000000e+00> : vector<8x16xf32>
    %79 = tpu.matmul %74, %75, %cst_37 {dimension_numbers = #tpu.dot_dimension_numbers<[1], [1], [0], [0], [0, 0, 1, 0], [], []>} : vector<8x16xbf16>, vector<16x16xbf16>, vector<8x16xf32> -> vector<8x16xf32>
    %cst_38 = arith.constant dense<0.000000e+00> : vector<8x8xf32>
    %80 = tpu.matmul %74, %76, %cst_38 {dimension_numbers = #tpu.dot_dimension_numbers<[1], [1], [0], [0], [0, 0, 1, 0], [], []>} : vector<8x16xbf16>, vector<8x16xbf16>, vector<8x8xf32> -> vector<8x8xf32>
    %cst_39 = arith.constant dense<0xFF800000> : vector<8xf32>
    %81 = vector.multi_reduction <maximumf>, %79, %cst_39 [1] : vector<8x16xf32> to vector<8xf32>
    %82 = vector.shape_cast %81 : vector<8xf32> to vector<8x1xf32>
    %cst_40 = arith.constant dense<0xFF800000> : vector<8xf32>
    %83 = vector.multi_reduction <maximumf>, %80, %cst_40 [1] : vector<8x8xf32> to vector<8xf32>
    %84 = vector.shape_cast %83 : vector<8xf32> to vector<8x1xf32>
    %85 = arith.maximumf %82, %84 : vector<8x1xf32>
    %86 = vector.broadcast %85 : vector<8x1xf32> to vector<8x16xf32>
    %87 = arith.subf %79, %86 : vector<8x16xf32>
    %88 = math.exp %87 : vector<8x16xf32>
    %89 = vector.broadcast %85 : vector<8x1xf32> to vector<8x8xf32>
    %90 = arith.subf %80, %89 : vector<8x8xf32>
    %91 = math.exp %90 : vector<8x8xf32>
    %cst_41 = arith.constant dense<0.000000e+00> : vector<8xf32>
    %92 = vector.multi_reduction <add>, %88, %cst_41 [1] : vector<8x16xf32> to vector<8xf32>
    %93 = vector.shape_cast %92 : vector<8xf32> to vector<8x1xf32>
    %cst_42 = arith.constant dense<0.000000e+00> : vector<8xf32>
    %94 = vector.multi_reduction <add>, %91, %cst_42 [1] : vector<8x8xf32> to vector<8xf32>
    %95 = vector.shape_cast %94 : vector<8xf32> to vector<8x1xf32>
    %96 = arith.addf %93, %95 : vector<8x1xf32>
    %97 = arith.truncf %88 : vector<8x16xf32> to vector<8x16xbf16>
    %cst_43 = arith.constant dense<0.000000e+00> : vector<8x16xf32>
    %98 = tpu.matmul %97, %77, %cst_43 {dimension_numbers = #tpu.dot_dimension_numbers<[1], [0], [0], [1], [0, 0, 1, 1], [], []>} : vector<8x16xbf16>, vector<16x16xbf16>, vector<8x16xf32> -> vector<8x16xf32>
    %99 = arith.truncf %91 : vector<8x8xf32> to vector<8x8xbf16>
    %cst_44 = arith.constant dense<0.000000e+00> : vector<8x16xf32>
    %100 = tpu.matmul %99, %78, %cst_44 {dimension_numbers = #tpu.dot_dimension_numbers<[1], [0], [0], [1], [0, 0, 1, 1], [], []>} : vector<8x8xbf16>, vector<8x16xbf16>, vector<8x16xf32> -> vector<8x16xf32>
    %101 = arith.addf %98, %100 : vector<8x16xf32>
    %102 = tpu.reciprocal %96 {approx = true} : vector<8x1xf32> -> vector<8x1xf32>
    %103 = vector.broadcast %102 : vector<8x1xf32> to vector<8x16xf32>
    %104 = arith.mulf %101, %103 : vector<8x16xf32>
    %105 = arith.truncf %104 : vector<8x16xf32> to vector<8x16xbf16>
    %c0_45 = arith.constant 0 : index
    %c0_46 = arith.constant 0 : index
    %106 = vector.load %arg10[%c0_45, %c0_46] : memref<32x32xbf16, #tpu.memory_space<vmem>>, vector<16x32xbf16>
    %cst_47 = arith.constant dense<0.000000e+00> : vector<8x32xf32>
    %107 = tpu.matmul %105, %106, %cst_47 {dimension_numbers = #tpu.dot_dimension_numbers<[1], [0], [0], [1], [0, 0, 1, 1], [], []>} : vector<8x16xbf16>, vector<16x32xbf16>, vector<8x32xf32> -> vector<8x32xf32>
    %108 = arith.addf %73, %107 : vector<8x32xf32>
    %109 = vector.extract_strided_slice %68 {offsets = [0, 16], sizes = [8, 16], strides = [1, 1]} : vector<16x32xbf16> to vector<8x16xbf16>
    %110 = vector.extract_strided_slice %69 {offsets = [0, 16], sizes = [16, 16], strides = [1, 1]} : vector<32x32xbf16> to vector<16x16xbf16>
    %111 = vector.extract_strided_slice %70 {offsets = [0, 16], sizes = [8, 16], strides = [1, 1]} : vector<16x32xbf16> to vector<8x16xbf16>
    %112 = vector.extract_strided_slice %71 {offsets = [0, 16], sizes = [16, 16], strides = [1, 1]} : vector<32x32xbf16> to vector<16x16xbf16>
    %113 = vector.extract_strided_slice %72 {offsets = [0, 16], sizes = [8, 16], strides = [1, 1]} : vector<16x32xbf16> to vector<8x16xbf16>
    %cst_48 = arith.constant dense<0.000000e+00> : vector<8x16xf32>
    %114 = tpu.matmul %109, %110, %cst_48 {dimension_numbers = #tpu.dot_dimension_numbers<[1], [1], [0], [0], [0, 0, 1, 0], [], []>} : vector<8x16xbf16>, vector<16x16xbf16>, vector<8x16xf32> -> vector<8x16xf32>
    %cst_49 = arith.constant dense<0.000000e+00> : vector<8x8xf32>
    %115 = tpu.matmul %109, %111, %cst_49 {dimension_numbers = #tpu.dot_dimension_numbers<[1], [1], [0], [0], [0, 0, 1, 0], [], []>} : vector<8x16xbf16>, vector<8x16xbf16>, vector<8x8xf32> -> vector<8x8xf32>
    %cst_50 = arith.constant dense<0xFF800000> : vector<8xf32>
    %116 = vector.multi_reduction <maximumf>, %114, %cst_50 [1] : vector<8x16xf32> to vector<8xf32>
    %117 = vector.shape_cast %116 : vector<8xf32> to vector<8x1xf32>
    %cst_51 = arith.constant dense<0xFF800000> : vector<8xf32>
    %118 = vector.multi_reduction <maximumf>, %115, %cst_51 [1] : vector<8x8xf32> to vector<8xf32>
    %119 = vector.shape_cast %118 : vector<8xf32> to vector<8x1xf32>
    %120 = arith.maximumf %117, %119 : vector<8x1xf32>
    %121 = vector.broadcast %120 : vector<8x1xf32> to vector<8x16xf32>
    %122 = arith.subf %114, %121 : vector<8x16xf32>
    %123 = math.exp %122 : vector<8x16xf32>
    %124 = vector.broadcast %120 : vector<8x1xf32> to vector<8x8xf32>
    %125 = arith.subf %115, %124 : vector<8x8xf32>
    %126 = math.exp %125 : vector<8x8xf32>
    %cst_52 = arith.constant dense<0.000000e+00> : vector<8xf32>
    %127 = vector.multi_reduction <add>, %123, %cst_52 [1] : vector<8x16xf32> to vector<8xf32>
    %128 = vector.shape_cast %127 : vector<8xf32> to vector<8x1xf32>
    %cst_53 = arith.constant dense<0.000000e+00> : vector<8xf32>
    %129 = vector.multi_reduction <add>, %126, %cst_53 [1] : vector<8x8xf32> to vector<8xf32>
    %130 = vector.shape_cast %129 : vector<8xf32> to vector<8x1xf32>
    %131 = arith.addf %128, %130 : vector<8x1xf32>
    %132 = arith.truncf %123 : vector<8x16xf32> to vector<8x16xbf16>
    %cst_54 = arith.constant dense<0.000000e+00> : vector<8x16xf32>
    %133 = tpu.matmul %132, %112, %cst_54 {dimension_numbers = #tpu.dot_dimension_numbers<[1], [0], [0], [1], [0, 0, 1, 1], [], []>} : vector<8x16xbf16>, vector<16x16xbf16>, vector<8x16xf32> -> vector<8x16xf32>
    %134 = arith.truncf %126 : vector<8x8xf32> to vector<8x8xbf16>
    %cst_55 = arith.constant dense<0.000000e+00> : vector<8x16xf32>
    %135 = tpu.matmul %134, %113, %cst_55 {dimension_numbers = #tpu.dot_dimension_numbers<[1], [0], [0], [1], [0, 0, 1, 1], [], []>} : vector<8x8xbf16>, vector<8x16xbf16>, vector<8x16xf32> -> vector<8x16xf32>
    %136 = arith.addf %133, %135 : vector<8x16xf32>
    %137 = tpu.reciprocal %131 {approx = true} : vector<8x1xf32> -> vector<8x1xf32>
    %138 = vector.broadcast %137 : vector<8x1xf32> to vector<8x16xf32>
    %139 = arith.mulf %136, %138 : vector<8x16xf32>
    %140 = arith.truncf %139 : vector<8x16xf32> to vector<8x16xbf16>
    %c16 = arith.constant 16 : index
    %c0_56 = arith.constant 0 : index
    %141 = vector.load %arg10[%c16, %c0_56] : memref<32x32xbf16, #tpu.memory_space<vmem>>, vector<16x32xbf16>
    %cst_57 = arith.constant dense<0.000000e+00> : vector<8x32xf32>
    %142 = tpu.matmul %140, %141, %cst_57 {dimension_numbers = #tpu.dot_dimension_numbers<[1], [0], [0], [1], [0, 0, 1, 1], [], []>} : vector<8x16xbf16>, vector<16x32xbf16>, vector<8x32xf32> -> vector<8x32xf32>
    %143 = arith.addf %108, %142 : vector<8x32xf32>
    %c0_58 = arith.constant 0 : index
    %c0_59 = arith.constant 0 : index
    %144 = vector.load %arg11[%c0_58, %c0_59] : memref<16x32xf32, #tpu.memory_space<vmem>>, vector<8x32xf32>
    tpu.vector_store %arg11[%c0_58, %c0_59], %143 {strides = array<i32>} : memref<16x32xf32, #tpu.memory_space<vmem>>, vector<8x32xf32>,
    %cst_60 = arith.constant 0.000000e+00 : f32
    %145 = vector.broadcast %cst_60 : f32 to vector<8x32xf32>
    %146 = vector.extract_strided_slice %68 {offsets = [8, 0], sizes = [8, 16], strides = [1, 1]} : vector<16x32xbf16> to vector<8x16xbf16>
    %147 = vector.extract_strided_slice %69 {offsets = [16, 0], sizes = [16, 16], strides = [1, 1]} : vector<32x32xbf16> to vector<16x16xbf16>
    %148 = vector.extract_strided_slice %70 {offsets = [8, 0], sizes = [8, 16], strides = [1, 1]} : vector<16x32xbf16> to vector<8x16xbf16>
    %149 = vector.extract_strided_slice %71 {offsets = [16, 0], sizes = [16, 16], strides = [1, 1]} : vector<32x32xbf16> to vector<16x16xbf16>
    %150 = vector.extract_strided_slice %72 {offsets = [8, 0], sizes = [8, 16], strides = [1, 1]} : vector<16x32xbf16> to vector<8x16xbf16>
    %cst_61 = arith.constant dense<0.000000e+00> : vector<8x16xf32>
    %151 = tpu.matmul %146, %147, %cst_61 {dimension_numbers = #tpu.dot_dimension_numbers<[1], [1], [0], [0], [0, 0, 1, 0], [], []>} : vector<8x16xbf16>, vector<16x16xbf16>, vector<8x16xf32> -> vector<8x16xf32>
    %cst_62 = arith.constant dense<0.000000e+00> : vector<8x8xf32>
    %152 = tpu.matmul %146, %148, %cst_62 {dimension_numbers = #tpu.dot_dimension_numbers<[1], [1], [0], [0], [0, 0, 1, 0], [], []>} : vector<8x16xbf16>, vector<8x16xbf16>, vector<8x8xf32> -> vector<8x8xf32>
    %cst_63 = arith.constant dense<0xFF800000> : vector<8xf32>
    %153 = vector.multi_reduction <maximumf>, %151, %cst_63 [1] : vector<8x16xf32> to vector<8xf32>
    %154 = vector.shape_cast %153 : vector<8xf32> to vector<8x1xf32>
    %cst_64 = arith.constant dense<0xFF800000> : vector<8xf32>
    %155 = vector.multi_reduction <maximumf>, %152, %cst_64 [1] : vector<8x8xf32> to vector<8xf32>
    %156 = vector.shape_cast %155 : vector<8xf32> to vector<8x1xf32>
    %157 = arith.maximumf %154, %156 : vector<8x1xf32>
    %158 = vector.broadcast %157 : vector<8x1xf32> to vector<8x16xf32>
    %159 = arith.subf %151, %158 : vector<8x16xf32>
    %160 = math.exp %159 : vector<8x16xf32>
    %161 = vector.broadcast %157 : vector<8x1xf32> to vector<8x8xf32>
    %162 = arith.subf %152, %161 : vector<8x8xf32>
    %163 = math.exp %162 : vector<8x8xf32>
    %cst_65 = arith.constant dense<0.000000e+00> : vector<8xf32>
    %164 = vector.multi_reduction <add>, %160, %cst_65 [1] : vector<8x16xf32> to vector<8xf32>
    %165 = vector.shape_cast %164 : vector<8xf32> to vector<8x1xf32>
    %cst_66 = arith.constant dense<0.000000e+00> : vector<8xf32>
    %166 = vector.multi_reduction <add>, %163, %cst_66 [1] : vector<8x8xf32> to vector<8xf32>
    %167 = vector.shape_cast %166 : vector<8xf32> to vector<8x1xf32>
    %168 = arith.addf %165, %167 : vector<8x1xf32>
    %169 = arith.truncf %160 : vector<8x16xf32> to vector<8x16xbf16>
    %cst_67 = arith.constant dense<0.000000e+00> : vector<8x16xf32>
    %170 = tpu.matmul %169, %149, %cst_67 {dimension_numbers = #tpu.dot_dimension_numbers<[1], [0], [0], [1], [0, 0, 1, 1], [], []>} : vector<8x16xbf16>, vector<16x16xbf16>, vector<8x16xf32> -> vector<8x16xf32>
    %171 = arith.truncf %163 : vector<8x8xf32> to vector<8x8xbf16>
    %cst_68 = arith.constant dense<0.000000e+00> : vector<8x16xf32>
    %172 = tpu.matmul %171, %150, %cst_68 {dimension_numbers = #tpu.dot_dimension_numbers<[1], [0], [0], [1], [0, 0, 1, 1], [], []>} : vector<8x8xbf16>, vector<8x16xbf16>, vector<8x16xf32> -> vector<8x16xf32>
    %173 = arith.addf %170, %172 : vector<8x16xf32>
    %174 = tpu.reciprocal %168 {approx = true} : vector<8x1xf32> -> vector<8x1xf32>
    %175 = vector.broadcast %174 : vector<8x1xf32> to vector<8x16xf32>
    %176 = arith.mulf %173, %175 : vector<8x16xf32>
    %177 = arith.truncf %176 : vector<8x16xf32> to vector<8x16xbf16>
    %c0_69 = arith.constant 0 : index
    %c0_70 = arith.constant 0 : index
    %178 = vector.load %arg10[%c0_69, %c0_70] : memref<32x32xbf16, #tpu.memory_space<vmem>>, vector<16x32xbf16>
    %cst_71 = arith.constant dense<0.000000e+00> : vector<8x32xf32>
    %179 = tpu.matmul %177, %178, %cst_71 {dimension_numbers = #tpu.dot_dimension_numbers<[1], [0], [0], [1], [0, 0, 1, 1], [], []>} : vector<8x16xbf16>, vector<16x32xbf16>, vector<8x32xf32> -> vector<8x32xf32>
    %180 = arith.addf %145, %179 : vector<8x32xf32>
    %181 = vector.extract_strided_slice %68 {offsets = [8, 16], sizes = [8, 16], strides = [1, 1]} : vector<16x32xbf16> to vector<8x16xbf16>
    %182 = vector.extract_strided_slice %69 {offsets = [16, 16], sizes = [16, 16], strides = [1, 1]} : vector<32x32xbf16> to vector<16x16xbf16>
    %183 = vector.extract_strided_slice %70 {offsets = [8, 16], sizes = [8, 16], strides = [1, 1]} : vector<16x32xbf16> to vector<8x16xbf16>
    %184 = vector.extract_strided_slice %71 {offsets = [16, 16], sizes = [16, 16], strides = [1, 1]} : vector<32x32xbf16> to vector<16x16xbf16>
    %185 = vector.extract_strided_slice %72 {offsets = [8, 16], sizes = [8, 16], strides = [1, 1]} : vector<16x32xbf16> to vector<8x16xbf16>
    %cst_72 = arith.constant dense<0.000000e+00> : vector<8x16xf32>
    %186 = tpu.matmul %181, %182, %cst_72 {dimension_numbers = #tpu.dot_dimension_numbers<[1], [1], [0], [0], [0, 0, 1, 0], [], []>} : vector<8x16xbf16>, vector<16x16xbf16>, vector<8x16xf32> -> vector<8x16xf32>
    %cst_73 = arith.constant dense<0.000000e+00> : vector<8x8xf32>
    %187 = tpu.matmul %181, %183, %cst_73 {dimension_numbers = #tpu.dot_dimension_numbers<[1], [1], [0], [0], [0, 0, 1, 0], [], []>} : vector<8x16xbf16>, vector<8x16xbf16>, vector<8x8xf32> -> vector<8x8xf32>
    %cst_74 = arith.constant dense<0xFF800000> : vector<8xf32>
    %188 = vector.multi_reduction <maximumf>, %186, %cst_74 [1] : vector<8x16xf32> to vector<8xf32>
    %189 = vector.shape_cast %188 : vector<8xf32> to vector<8x1xf32>
    %cst_75 = arith.constant dense<0xFF800000> : vector<8xf32>
    %190 = vector.multi_reduction <maximumf>, %187, %cst_75 [1] : vector<8x8xf32> to vector<8xf32>
    %191 = vector.shape_cast %190 : vector<8xf32> to vector<8x1xf32>
    %192 = arith.maximumf %189, %191 : vector<8x1xf32>
    %193 = vector.broadcast %192 : vector<8x1xf32> to vector<8x16xf32>
    %194 = arith.subf %186, %193 : vector<8x16xf32>
    %195 = math.exp %194 : vector<8x16xf32>
    %196 = vector.broadcast %192 : vector<8x1xf32> to vector<8x8xf32>
    %197 = arith.subf %187, %196 : vector<8x8xf32>
    %198 = math.exp %197 : vector<8x8xf32>
    %cst_76 = arith.constant dense<0.000000e+00> : vector<8xf32>
    %199 = vector.multi_reduction <add>, %195, %cst_76 [1] : vector<8x16xf32> to vector<8xf32>
    %200 = vector.shape_cast %199 : vector<8xf32> to vector<8x1xf32>
    %cst_77 = arith.constant dense<0.000000e+00> : vector<8xf32>
    %201 = vector.multi_reduction <add>, %198, %cst_77 [1] : vector<8x8xf32> to vector<8xf32>
    %202 = vector.shape_cast %201 : vector<8xf32> to vector<8x1xf32>
    %203 = arith.addf %200, %202 : vector<8x1xf32>
    %204 = arith.truncf %195 : vector<8x16xf32> to vector<8x16xbf16>
    %cst_78 = arith.constant dense<0.000000e+00> : vector<8x16xf32>
    %205 = tpu.matmul %204, %184, %cst_78 {dimension_numbers = #tpu.dot_dimension_numbers<[1], [0], [0], [1], [0, 0, 1, 1], [], []>} : vector<8x16xbf16>, vector<16x16xbf16>, vector<8x16xf32> -> vector<8x16xf32>
    %206 = arith.truncf %198 : vector<8x8xf32> to vector<8x8xbf16>
    %cst_79 = arith.constant dense<0.000000e+00> : vector<8x16xf32>
    %207 = tpu.matmul %206, %185, %cst_79 {dimension_numbers = #tpu.dot_dimension_numbers<[1], [0], [0], [1], [0, 0, 1, 1], [], []>} : vector<8x8xbf16>, vector<8x16xbf16>, vector<8x16xf32> -> vector<8x16xf32>
    %208 = arith.addf %205, %207 : vector<8x16xf32>
    %209 = tpu.reciprocal %203 {approx = true} : vector<8x1xf32> -> vector<8x1xf32>
    %210 = vector.broadcast %209 : vector<8x1xf32> to vector<8x16xf32>
    %211 = arith.mulf %208, %210 : vector<8x16xf32>
    %212 = arith.truncf %211 : vector<8x16xf32> to vector<8x16xbf16>
    %c16_80 = arith.constant 16 : index
    %c0_81 = arith.constant 0 : index
    %213 = vector.load %arg10[%c16_80, %c0_81] : memref<32x32xbf16, #tpu.memory_space<vmem>>, vector<16x32xbf16>
    %cst_82 = arith.constant dense<0.000000e+00> : vector<8x32xf32>
    %214 = tpu.matmul %212, %213, %cst_82 {dimension_numbers = #tpu.dot_dimension_numbers<[1], [0], [0], [1], [0, 0, 1, 1], [], []>} : vector<8x16xbf16>, vector<16x32xbf16>, vector<8x32xf32> -> vector<8x32xf32>
    %215 = arith.addf %180, %214 : vector<8x32xf32>
    %c8 = arith.constant 8 : index
    %c0_83 = arith.constant 0 : index
    %216 = vector.load %arg11[%c8, %c0_83] : memref<16x32xf32, #tpu.memory_space<vmem>>, vector<8x32xf32>
    tpu.vector_store %arg11[%c8, %c0_83], %215 {strides = array<i32>} : memref<16x32xf32, #tpu.memory_space<vmem>>, vector<8x32xf32>,
    return
  }
  func.func @transform_0(%arg0: i32) -> (i32, i32) {
    %c0_i32 = arith.constant 0 : i32
    %c0_i32_0 = arith.constant 0 : i32
    %c0_i32_1 = arith.constant 0 : i32
    return %c0_i32, %c0_i32_0 : i32, i32
  }
  func.func @transform_1(%arg0: i32) -> (i32, i32) {
    %c0_i32 = arith.constant 0 : i32
    %c0_i32_0 = arith.constant 0 : i32
    %c0_i32_1 = arith.constant 0 : i32
    return %c0_i32, %c0_i32_0 : i32, i32
  }
  func.func @transform_2(%arg0: i32) -> (i32, i32) {
    %c0_i32 = arith.constant 0 : i32
    %c0_i32_0 = arith.constant 0 : i32
    %c0_i32_1 = arith.constant 0 : i32
    return %c0_i32, %c0_i32_0 : i32, i32
  }
  func.func @transform_3(%arg0: i32) -> (i32, i32) {
    %c0_i32 = arith.constant 0 : i32
    %c0_i32_0 = arith.constant 0 : i32
    %c0_i32_1 = arith.constant 0 : i32
    return %c0_i32, %c0_i32_0 : i32, i32
  }
  func.func @transform_4(%arg0: i32) -> (i32, i32) {
    %c0_i32 = arith.constant 0 : i32
    %c0_i32_0 = arith.constant 0 : i32
    %c0_i32_1 = arith.constant 0 : i32
    return %c0_i32, %c0_i32_0 : i32, i32
  }
  func.func @transform_5(%arg0: i32) -> (i32, i32) {
    %c0_i32 = arith.constant 0 : i32
    %c0_i32_0 = arith.constant 0 : i32
    %c0_i32_1 = arith.constant 0 : i32
    return %c0_i32, %c0_i32_0 : i32, i32
  }
  func.func @transform_6(%arg0: i32) -> (i32, i32) {
    %c0_i32 = arith.constant 0 : i32
    %c0_i32_0 = arith.constant 0 : i32
    %c0_i32_1 = arith.constant 0 : i32
    return %c0_i32, %c0_i32_0 : i32, i32
  }
  func.func @transform_7(%arg0: i32) -> (i32, i32) {
    %c0_i32 = arith.constant 0 : i32
    %c0_i32_0 = arith.constant 0 : i32
    %c0_i32_1 = arith.constant 0 : i32
    return %c0_i32, %c0_i32_0 : i32, i32
  }
  func.func @transform_8(%arg0: i32) -> (i32, i32) {
    %c0_i32 = arith.constant 0 : i32
    %c0_i32_0 = arith.constant 0 : i32
    %c0_i32_1 = arith.constant 0 : i32
    return %c0_i32, %c0_i32_0 : i32, i32
  }
  func.func @transform_9(%arg0: i32) -> (i32, i32) {
    %c0_i32 = arith.constant 0 : i32
    %c0_i32_0 = arith.constant 0 : i32
    %c0_i32_1 = arith.constant 0 : i32
    return %c0_i32, %c0_i32_0 : i32, i32
  }
  func.func @transform_10(%arg0: i32) -> (i32, i32) {
    %c0_i32 = arith.constant 0 : i32
    %c0_i32_0 = arith.constant 0 : i32
    %c0_i32_1 = arith.constant 0 : i32
    return %c0_i32, %c0_i32_0 : i32, i32
  }
}

</mosaic_0001>

<bundles_post_ra>
// kernel: tpu_custom_call.1
= control target key start
LH: loop header
LB: loop body
LE: loop exit
PB: predicated region body
PF: predicated region fallthrough
CT: control target
= control target key end

     0   :  { %15 = vsyncpa [#allocation3], 0  ;;  %s2529_s0 = inlined_call_operand.hbm [shape: f32[32,32], index: 0, kind: input, shape index: {}]   ;;  %s2530_s1 = inlined_call_operand.hbm [shape: f32[16,32], index: 1, kind: input, shape index: {}]   ;;  %s2531_s2 = inlined_call_operand.hbm [shape: f32[1,32], index: 2, kind: input, shape index: {}]   ;;  %s2532_s3 = inlined_call_operand.hbm [shape: f32[1,32], index: 3, kind: input, shape index: {}]   ;;  %s2533_s4 = inlined_call_operand.hbm [shape: f32[1,32], index: 4, kind: input, shape index: {}]   ;;  %s2534_s5 = inlined_call_operand.hbm [shape: f32[1,32], index: 5, kind: input, shape index: {}]   ;;  %s2535_s6 = inlined_call_operand.hbm [shape: bf16[32,32], index: 6, kind: input, shape index: {}]   ;;  %s2536_s7 = inlined_call_operand.hbm [shape: bf16[32,32], index: 7, kind: input, shape index: {}]   ;;  %s2537_s8 = inlined_call_operand.hbm [shape: bf16[32,32], index: 8, kind: input, shape index: {}]   ;;  %s2538_s9 = inlined_call_operand.vmem [shape: bf16[32,32], index: 9, kind: input, shape index: {}]   ;;  %s2539_s10 = inlined_call_operand.hbm [shape: f32[16,32], index: 10, kind: output, shape index: {}]  }
   0x1   :  { %16 = vsyncpa [#allocation6], 0 }
   0x2   :  { %17 = vsyncpa [#allocation9], 0 }
   0x3   :  { %18 = vsyncpa [#allocation12], 0 }
   0x4   :  { %19 = vsyncpa [#allocation15], 0 }
   0x5   :  { %20 = vsyncpa [#allocation4], 0  ;;  %s2174_s13 = smov [#allocation5]   ;;  %s2175_s15 = smov [#allocation8]  }
   0x6   :  { %s38_s14 = sshll.u32 %s2174_s13, 4  ;;  %s61_s16 = sshll.u32 %s2175_s15, 4  ;;  %s39_s14 = int_to_ptr.vmem [resolvable:$true] %s38_s14  ;;  %s62_s16 = int_to_ptr.vmem [resolvable:$true] %s61_s16 }
   0x7   :  { %s1970_s17 = scalar_lea.vmem %s39_s14, 256  ;;  %p1975_p1 = scmp.lt.s32.totalorder %s39_s14, %s39_s14 }
   0x8   :  { %p1971_p0 = scmp.ne.s32.totalorder %s39_s14, %s1970_s17  ;;  %p1976_p2 = scmp.lt.s32.totalorder %s1970_s17, %s1970_s17 }
   0xa   :  { %p1977_p3 = por %p1976_p2, %p1975_p1 }
   0xc   :  { %p1978_p4 = pnand %p1977_p3, %p1971_p0 }
   0xe   :  { %1981 = shalt.err (!%p1978_p4)
}
   0xf   :  { %s2176_s18 = smov 128   ;;  %s2177_s19 = smov 8  }
  0x10   :  { %44 = dma.hbm_to_vmem [thread:$0]  %s2530_s1, 256, %s39_s14, [#allocation6], %s2176_s18, %s2176_s18, %s2177_s19  }
  0x11   :  { %s1990_s22 = scalar_lea.vmem %s62_s16, 16  ;;  %s1994_s23 = scalar_lea.vmem %s62_s16, 32 }
  0x12   :  { %p1991_p5 = scmp.ne.s32.totalorder %s62_s16, %s1990_s22  ;;  %p1995_p6 = scmp.lt.s32.totalorder %s62_s16, %s62_s16 }
  0x13   :  { %p1996_p7 = scmp.lt.s32.totalorder %s1994_s23, %s1990_s22 }
  0x15   :  { %p1997_p8 = por %p1996_p7, %p1995_p6 }
  0x17   :  { %p1998_p9 = pnand %p1997_p8, %p1991_p5 }
  0x19   :  { %2001 = shalt.err (!%p1998_p9)
}
  0x1a   :  { %64 = dma.hbm_to_vmem [thread:$0]  %s2532_s3, 16, %s62_s16, [#allocation9]  }
  0x1b   :  { %s2178_s26 = smov [#allocation11]  }
  0x1c   :  { %s81_s27 = sshll.u32 %s2178_s26, 4  ;;  %s82_s27 = int_to_ptr.vmem [resolvable:$true] %s81_s27 }
  0x1d   :  { %s2010_s28 = scalar_lea.vmem %s82_s27, 16  ;;  %s2014_s29 = scalar_lea.vmem %s82_s27, 32 }
  0x1e   :  { %p2011_p10 = scmp.ne.s32.totalorder %s82_s27, %s2010_s28  ;;  %p2015_p11 = scmp.lt.s32.totalorder %s82_s27, %s82_s27 }
  0x1f   :  { %p2016_p12 = scmp.lt.s32.totalorder %s2014_s29, %s2010_s28 }
  0x21   :  { %p2017_p13 = por %p2016_p12, %p2015_p11 }
  0x23   :  { %p2018_p0 = pnand %p2017_p13, %p2011_p10 }
  0x25   :  { %2021 = shalt.err (!%p2018_p0)
}
  0x26   :  { %84 = dma.hbm_to_vmem [thread:$0]  %s2534_s5, 16, %s82_s27, [#allocation12]  }
  0x27   :  { %s2179_s11 = smov [#allocation14]   ;;  %s2180_s13 = smov [#allocation2]  }
  0x28   :  { %s102_s12 = sshll.u32 %s2179_s11, 4  ;;  %s26_s3 = sshll.u32 %s2180_s13, 4  ;;  %s103_s12 = int_to_ptr.vmem [resolvable:$true] %s102_s12  ;;  %s27_s3 = int_to_ptr.vmem [resolvable:$true] %s26_s3 }
  0x29   :  { %s2030_s14 = scalar_lea.vmem %s103_s12, 256  ;;  %p2035_p2 = scmp.lt.s32.totalorder %s103_s12, %s103_s12 }
  0x2a   :  { %p2031_p1 = scmp.ne.s32.totalorder %s103_s12, %s2030_s14  ;;  %p2036_p3 = scmp.lt.s32.totalorder %s2030_s14, %s2030_s14 }
  0x2c   :  { %p2037_p4 = por %p2036_p3, %p2035_p2 }
  0x2e   :  { %p2038_p5 = pnand %p2037_p4, %p2031_p1 }
  0x30   :  { %2041 = shalt.err (!%p2038_p5)
}
  0x31   :  { %s2181_s15 = smov 64   ;;  %s2182_s16 = smov 4  }
  0x32   :  { %108 = dma.hbm_to_vmem [thread:$0]  %s2536_s7, 256, %s103_s12, [#allocation15], %s2181_s15, %s2181_s15, %s2182_s16  }
  0x33   :  { %s2050_s5 = scalar_lea.vmem %s27_s3, 512  ;;  %p2055_p7 = scmp.lt.s32.totalorder %s27_s3, %s27_s3 }
  0x34   :  { %p2051_p6 = scmp.ne.s32.totalorder %s27_s3, %s2050_s5  ;;  %p2056_p8 = scmp.lt.s32.totalorder %s2050_s5, %s2050_s5 }
  0x36   :  { %p2057_p9 = por %p2056_p8, %p2055_p7 }
  0x38   :  { %p2058_p10 = pnand %p2057_p9, %p2051_p6 }
  0x3a   :  { %2061 = shalt.err (!%p2058_p10)
}
  0x3b   :  { %32 = dma.hbm_to_vmem [thread:$0]  %s2529_s0, 512, %s27_s3, [#allocation3], %s2176_s18, %s2176_s18, %s2177_s19  }
  0x3c   :  { %s2183_s23 = smov [#allocation7]   ;;  %s2184_s25 = smov [#allocation10]  }
  0x3d   :  { %s51_s24 = sshll.u32 %s2183_s23, 4  ;;  %s71_s7 = sshll.u32 %s2184_s25, 4  ;;  %s52_s24 = int_to_ptr.vmem [resolvable:$true] %s51_s24  ;;  %s72_s7 = int_to_ptr.vmem [resolvable:$true] %s71_s7 }
  0x3e   :  { %s2070_s26 = scalar_lea.vmem %s52_s24, 16  ;;  %s2074_s27 = scalar_lea.vmem %s52_s24, 32 }
  0x3f   :  { %p2071_p11 = scmp.ne.s32.totalorder %s52_s24, %s2070_s26  ;;  %p2075_p12 = scmp.lt.s32.totalorder %s52_s24, %s52_s24 }
  0x40   :  { %p2076_p13 = scmp.lt.s32.totalorder %s2074_s27, %s2070_s26 }
  0x42   :  { %p2077_p0 = por %p2076_p13, %p2075_p12 }
  0x44   :  { %p2078_p1 = pnand %p2077_p0, %p2071_p11 }
  0x46   :  { %2081 = shalt.err (!%p2078_p1)
}
  0x47   :  { %54 = dma.hbm_to_vmem [thread:$0]  %s2531_s2, 16, %s52_s24, [#allocation6]  }
  0x48   :  { %s2090_s1 = scalar_lea.vmem %s72_s7, 16  ;;  %s2094_s0 = scalar_lea.vmem %s72_s7, 32 }
  0x49   :  { %p2091_p2 = scmp.ne.s32.totalorder %s72_s7, %s2090_s1  ;;  %p2095_p3 = scmp.lt.s32.totalorder %s72_s7, %s72_s7 }
  0x4a   :  { %p2096_p4 = scmp.lt.s32.totalorder %s2094_s0, %s2090_s1 }
  0x4c   :  { %p2097_p5 = por %p2096_p4, %p2095_p3 }
  0x4e   :  { %p2098_p6 = pnand %p2097_p5, %p2091_p2 }
  0x50   :  { %2101 = shalt.err (!%p2098_p6)
}
  0x51   :  { %74 = dma.hbm_to_vmem [thread:$0]  %s2533_s4, 16, %s72_s7, [#allocation9]  }
  0x52   :  { %s2185_s12 = smov [#allocation13]   ;;  %s2186_s3 = smov [#allocation16]  }
  0x53   :  { %s90_s13 = sshll.u32 %s2185_s12, 4  ;;  %s114_s14 = sshll.u32 %s2186_s3, 4  ;;  %s91_s13 = int_to_ptr.vmem [resolvable:$true] %s90_s13  ;;  %s115_s14 = int_to_ptr.vmem [resolvable:$true] %s114_s14 }
  0x54   :  { %s2110_s17 = scalar_lea.vmem %s91_s13, 256  ;;  %p2115_p8 = scmp.lt.s32.totalorder %s91_s13, %s91_s13 }
  0x55   :  { %p2111_p7 = scmp.ne.s32.totalorder %s91_s13, %s2110_s17  ;;  %p2116_p9 = scmp.lt.s32.totalorder %s2110_s17, %s2110_s17 }
  0x57   :  { %p2117_p10 = por %p2116_p9, %p2115_p8 }
  0x59   :  { %p2118_p11 = pnand %p2117_p10, %p2111_p7 }
  0x5b   :  { %2121 = shalt.err (!%p2118_p11)
}
  0x5c   :  { %96 = dma.hbm_to_vmem [thread:$0]  %s2535_s6, 256, %s91_s13, [#allocation12], %s2181_s15, %s2181_s15, %s2182_s16  }
  0x5d   :  { %s2130_s4 = scalar_lea.vmem %s115_s14, 256  ;;  %p2135_p13 = scmp.lt.s32.totalorder %s115_s14, %s115_s14 }
  0x5e   :  { %p2131_p12 = scmp.ne.s32.totalorder %s115_s14, %s2130_s4  ;;  %p2136_p0 = scmp.lt.s32.totalorder %s2130_s4, %s2130_s4 }
  0x60   :  { %p2137_p1 = por %p2136_p0, %p2135_p13 }
  0x62   :  { %p2138_p2 = pnand %p2137_p1, %p2131_p12 }
  0x64   :  { %2141 = shalt.err (!%p2138_p2)
}
  0x65   :  { %120 = dma.hbm_to_vmem [thread:$0]  %s2537_s8, 256, %s115_s14, [#allocation15], %s2181_s15, %s2181_s15, %s2182_s16  }
  0x66   :  { %2162 = dma.done.wait [#allocation3], 512  }
  0x67   :  { %2163 = vsyncadd [#allocation3], 4294966784 }
  0x68   :  { %2164 = dma.done.wait [#allocation6], 272  }
  0x69   :  { %2165 = vsyncadd [#allocation6], 4294967024 }
  0x6a   :  { %2166 = dma.done.wait [#allocation9], 32  }
  0x6b   :  { %2167 = vsyncadd [#allocation9], 4294967264 }
  0x6c   :  { %2168 = dma.done.wait [#allocation12], 272  }
  0x6d   :  { %2169 = vsyncadd [#allocation12], 4294967024 }
  0x6e   :  { %2170 = dma.done.wait [#allocation15], 512  }
  0x6f   :  { %2171 = vsyncadd [#allocation15], 4294966784  ;;  %vm159_vm0 = vcmask 261120   ;;  %v155_v0 = vld [vmem:[#allocation5] sm:$0xff]  ;;  %v156_v1 = vld [vmem:[#allocation5 + $0x8] sm:$0xff]  ;;  %v2187_v43 = vmov 0.0  }
  0x70   :  { %v151_v2 = vld [vmem:[#allocation2] sm:$0xff]  ;;  %v235_v3 = vsel %vm159_vm0, %v155_v0, 0.0  ;;  %v153_v5 = vld [vmem:[#allocation2 + $0x10] sm:$0xff]  ;;  %v152_v6 = vld [vmem:[#allocation2 + $0x8] sm:$0xff]  ;;  %v238_v8 = vsel %vm159_vm0, %v156_v1, 0.0  ;;  %1739 = vmatprep.subr.bf16.mxu0 %v2187_v43  ;;  %vm2188_vm1 = vmmov 0  }
  0x71   :  { %v160_v4 = vsel %vm159_vm0, %v151_v2, 0.0  ;;  %v154_v7 = vld [vmem:[#allocation2 + $0x18] sm:$0xff]  ;;  %236 = vadd.xlane.f32.xlu0 %v235_v3  ;;  %v166_v9 = vsel %vm159_vm0, %v153_v5, 0.0  ;;  %v163_v10 = vsel %vm159_vm0, %v152_v6, 0.0  ;;  %v1916_v42 = vld [vmem:[#allocation13 + $0x8] sm:$0xff]   ;;  %1743 = vmatprep.mubr.msk.bf16.mxu0 %vm2188_vm1, %v2187_v43  ;;  %v1918_v45 = vld [vmem:[#allocation14 + $0x8] sm:$0xff]  }
  0x72   :  { %161 = vadd.xlane.f32.xlu1 %v160_v4  ;;  %v169_v11 = vsel %vm159_vm0, %v154_v7, 0.0  ;;  %1740 = vmatpush3.bf16.msra.mxu0 %v1916_v42  ;;  %v1917_v44 = vld [vmem:[#allocation13] sm:$0xff]   ;;  %v2329_v46 = vld [vmem:[#allocation14] sm:$0xff]   ;;  %v2333_v47 = vld [vmem:[#allocation16 + $0x8] sm:$0xff]   ;;  %vm567_vm2 = vcmask 130048   ;;  %vm683_vm3 = vcmask 1043456  }
  0x73   :  { %1741 = vmatprep.subr.bf16.mxu0 %v2187_v43  ;;  %1747 = vmatprep.subr.bf16.mxu1 %v1918_v45  ;;  %v1643_v4 = vld [vmem:[#allocation10] ss:$0 sm:$0xff]  ;;  %vm660_vm4 = vcmask 64512   ;;  %s2189_s6 = smov 112  }
  0x74   :  { %1748 = vmatpush3.bf16.msra.mxu1 %v1918_v45 }
  0x75   :  { %239 = vadd.xlane.f32.xlu0 %v238_v8  ;;  %1749 = vmatprep.subr.bf16.mxu1 %v2329_v46 }
  0x76   :  { %164 = vadd.xlane.f32.xlu1 %v163_v10  ;;  %1742 = vmatpush3.bf16.msra.mxu0 %v1917_v44  ;;  %v1644_v10 = vld [vmem:[#allocation11] ss:$0 sm:$0xff] }
  0x77   :  { %1755 = vmatprep.subr.bf16.mxu0 %v2187_v43 }
  0x78   :  { %1750 = vmatpush3.bf16.msra.mxu1 %v2329_v46 }
  0x79   :  { %167 = vadd.xlane.f32.xlu0 %v166_v9  ;;  %1763 = vmatprep.subr.bf16.mxu1 %v2333_v47 }
  0x7a   :  { %170 = vadd.xlane.f32.xlu1 %v169_v11  ;;  %v1641_v11 = vld [vmem:[#allocation7] ss:$0 sm:$0xff] }
  0xfa   :  { %v237_v12 = vpop.xlane.xlu0 %236 }
  0xfb   :  { %v162_v13 = vpop.xlane.xlu1 %161  ;;  %v241_v14 = vmul.f32 0.03125, %v237_v12 }
  0xfc   :  { %v173_v15 = vmul.f32 0.03125, %v162_v13 }
  0xfd   :  { %v2294_v16 = vsub.f32 %v155_v0, %v241_v14 }
  0xfe   :  { %v2296_v17 = vsub.f32 %v151_v2, %v173_v15  ;;  %v240_v18 = vpop.xlane.xlu0 %239 }
  0xff   :  { %v165_v19 = vpop.xlane.xlu1 %164  ;;  %v242_v20 = vmul.f32 0.03125, %v240_v18  ;;  %v245_v21 = vmul.f32 %v2294_v16, %v2294_v16 }
 0x100   :  { %v174_v22 = vmul.f32 0.03125, %v165_v19  ;;  %v181_v23 = vmul.f32 %v2296_v17, %v2296_v17 }
 0x101   :  { %v2302_v24 = vsub.f32 %v156_v1, %v242_v20  ;;  %v247_v25 = vsel %vm159_vm0, %v245_v21, 0.0  ;;  %v1642_v21 = vld [vmem:[#allocation8] ss:$0 sm:$0xff] }
 0x102   :  { %v2305_v26 = vsub.f32 %v152_v6, %v174_v22  ;;  %248 = vadd.xlane.f32.xlu0 %v247_v25  ;;  %v168_v27 = vpop.xlane.xlu0 %167  ;;  %v185_v28 = vsel %vm159_vm0, %v181_v23, 0.0 }
 0x103   :  { %v171_v29 = vpop.xlane.xlu1 %170  ;;  %v175_v30 = vmul.f32 0.03125, %v168_v27  ;;  %v246_v31 = vmul.f32 %v2302_v24, %v2302_v24 }
 0x104   :  { %v176_v32 = vmul.f32 0.03125, %v171_v29  ;;  %v182_v33 = vmul.f32 %v2305_v26, %v2305_v26 }
 0x105   :  { %v2312_v34 = vsub.f32 %v153_v5, %v175_v30  ;;  %v250_v35 = vsel %vm159_vm0, %v246_v31, 0.0 }
 0x106   :  { %v2315_v36 = vsub.f32 %v154_v7, %v176_v32  ;;  %251 = vadd.xlane.f32.xlu1 %v250_v35  ;;  %186 = vadd.xlane.f32.xlu0 %v185_v28  ;;  %v188_v38 = vsel %vm159_vm0, %v182_v33, 0.0  ;;  %v1921_v33 = vld [vmem:[#allocation16] sm:$0xff]  }
 0x107   :  { %v183_v37 = vmul.f32 %v2312_v34, %v2312_v34 }
 0x108   :  { %v184_v39 = vmul.f32 %v2315_v36, %v2315_v36 }
 0x109   :  { %v191_v40 = vsel %vm159_vm0, %v183_v37, 0.0 }
 0x10a   :  { %192 = vadd.xlane.f32.xlu0 %v191_v40  ;;  %189 = vadd.xlane.f32.xlu1 %v188_v38  ;;  %v194_v41 = vsel %vm159_vm0, %v184_v39, 0.0 }
 0x10e   :  { %195 = vadd.xlane.f32.xlu1 %v194_v41 }
 0x18b   :  { %v249_v48 = vpop.xlane.xlu0 %248 }
 0x18c   :  { %v253_v49 = vmul.f32 0.03125, %v249_v48 }
 0x18e   :  { %v255_v50 = vadd.f32 1e-05, %v253_v49 }
 0x18f   :  { %v187_v51 = vpop.xlane.xlu0 %186  ;;  %v252_v52 = vpop.xlane.xlu1 %251 }
 0x190   :  { %1926 = vrsqrt.f32 %v255_v50  ;;  %v197_v53 = vmul.f32 0.03125, %v187_v51  ;;  %v254_v54 = vmul.f32 0.03125, %v252_v52 }
 0x192   :  { %v201_v55 = vadd.f32 1e-05, %v197_v53  ;;  %v256_v56 = vadd.f32 1e-05, %v254_v54 }
 0x193   :  { %v193_v57 = vpop.xlane.xlu0 %192  ;;  %v190_v58 = vpop.xlane.xlu1 %189 }
 0x194   :  { %1928 = vrsqrt.f32 %v201_v55  ;;  %v199_v59 = vmul.f32 0.03125, %v193_v57  ;;  %v198_v60 = vmul.f32 0.03125, %v190_v58 }
 0x195   :  { %1930 = vrsqrt.f32 %v256_v56 }
 0x196   :  { %v203_v61 = vadd.f32 1e-05, %v199_v59  ;;  %v202_v62 = vadd.f32 1e-05, %v198_v60 }
 0x197   :  { %v196_v63 = vpop.xlane.xlu1 %195 }
 0x198   :  { %1932 = vrsqrt.f32 %v203_v61  ;;  %v200_v0 = vmul.f32 0.03125, %v196_v63 }
 0x199   :  { %1934 = vrsqrt.f32 %v202_v62 }
 0x19a   :  { %v204_v1 = vadd.f32 1e-05, %v200_v0 }
 0x19c   :  { %1936 = vrsqrt.f32 %v204_v1 }
 0x19d   :  { %v1927_v2 = vpop.eup %1926 }
 0x19e   :  { %v259_v3 = vmul.f32 %v1927_v2, %v2294_v16 }
 0x1a0   :  { %v267_v8 = vmul.f32 %v1643_v4, %v259_v3 }
 0x1a1   :  { %v1929_v5 = vpop.eup %1928 }
 0x1a2   :  { %v1931_v6 = vpop.eup %1930  ;;  %v209_v9 = vmul.f32 %v1929_v5, %v2296_v17  ;;  %v275_v18 = vadd.f32 %v1644_v10, %v267_v8 }
 0x1a3   :  { %v260_v7 = vmul.f32 %v1931_v6, %v2302_v24 }
 0x1a4   :  { %v219_v16 = vmul.f32 %v1641_v11, %v209_v9 }
 0x1a5   :  { %v1933_v12 = vpop.eup %1932  ;;  %v268_v13 = vmul.f32 %v1643_v4, %v260_v7 }
 0x1a6   :  { %v1935_v14 = vpop.eup %1934  ;;  %v211_v15 = vmul.f32 %v1933_v12, %v2312_v34  ;;  %v229_v17 = vadd.f32 %v1642_v21, %v219_v16 }
 0x1a7   :  { %v276_v19 = vadd.f32 %v1644_v10, %v268_v13  ;;  %v210_v20 = vmul.f32 %v1935_v14, %v2305_v26 }
 0x1a8   :  { %v221_v27 = vmul.f32 %v1641_v11, %v211_v15 }
 0x1a9   :  { %v1937_v22 = vpop.eup %1936  ;;  %v279_v23 = vpack.c.bf16 %v276_v19, %v275_v18  ;;  %v220_v25 = vmul.f32 %v1641_v11, %v210_v20 }
 0x1aa   :  { %v212_v24 = vmul.f32 %v1937_v22, %v2315_v36  ;;  %v231_v26 = vadd.f32 %v1642_v21, %v221_v27 }
 0x1ab   :  { %1744 = vmatmul.mubr.msk.bf16.vlgmr.msra.gmra.mxu0 %vm159_vm0, %v279_v23  ;;  %v230_v28 = vadd.f32 %v1642_v21, %v220_v25 }
 0x1ac   :  { %1756 = vmatpush3.bf16.msra.mxu0 %v1918_v45  ;;  %1759 = vmatprep.mubr.msk.bf16.mxu0 %vm2188_vm1, %v2187_v43  ;;  %v222_v29 = vmul.f32 %v1641_v11, %v212_v24 }
 0x1ad   :  { %v277_v30 = vpack.c.bf16 %v230_v28, %v229_v17  ;;  %1757 = vmatprep.subr.bf16.mxu0 %v2187_v43 }
 0x1ae   :  { %v232_v31 = vadd.f32 %v1642_v21, %v222_v29 }
 0x1af   :  { %1751 = vmatprep.mubr.msk.bf16.mxu1 %vm159_vm0, %v277_v30 }
 0x1b0   :  { %1758 = vmatpush3.bf16.msra.mxu0 %v2329_v46  ;;  %v278_v32 = vpack.c.bf16 %v232_v31, %v231_v26 }
 0x1b1   :  { %1771 = vmatprep.subr.bf16.mxu0 %v2187_v43 }
 0x1b2   :  { %1752 = vmatmul.mubr.msk.bf16.vlgmr.msra.gmra.mxu1 %vm159_vm0, %v278_v32 }
 0x1b3   :  { %1760 = vmatmul.mubr.msk.bf16.vlgmr.msra.gmra.mxu0 %vm159_vm0, %v279_v23  ;;  %1764 = vmatpush3.bf16.msra.mxu1 %v2333_v47 }
 0x1b4   :  { %1767 = vmatprep.mubr.msk.bf16.mxu1 %vm159_vm0, %v277_v30  ;;  %1772 = vmatpush3.bf16.msra.mxu0 %v2333_v47 }
 0x1b5   :  { %1765 = vmatprep.subr.bf16.mxu1 %v1921_v33  ;;  %1773 = vmatprep.subr.bf16.mxu0 %v2187_v43 }
 0x1b6   :  { %1775 = vmatprep.mubr.msk.bf16.mxu0 %vm2188_vm1, %v2187_v43 }
 0x1b7   :  { %1766 = vmatpush3.bf16.msra.mxu1 %v1921_v33 }
 0x1b8   :  { %1774 = vmatpush3.bf16.msra.mxu0 %v1921_v33  ;;  %1779 = vmatprep.subr.bf16.mxu1 %v2187_v43 }
 0x1b9   :  { %1785 = vmatprep.subr.bf16.mxu0 %v2187_v43 }
 0x1ba   :  { %1768 = vmatmul.mubr.msk.bf16.vlgmr.msra.gmra.mxu1 %vm159_vm0, %v278_v32 }
 0x1bb   :  { %1776 = vmatmul.mubr.msk.bf16.vlgmr.msra.gmra.mxu0 %vm159_vm0, %v279_v23  ;;  %1781 = vmatprep.mubr.msk.bf16.mxu1 %vm2188_vm1, %v2187_v43 }
 0x1bc   :  { %1787 = vmatprep.mubr.msk.bf16.mxu0 %vm2188_vm1, %v2187_v43 }
 0x26b   :  { %v333_v34 = vpop.f32.mrf.mxu0 }
 0x26c   :  { %v558_v57 = vmul.f32 0.25, %v333_v34 }
 0x26d   :  { %v1745_v35 = vpop.f32.mrf.mxu0 }
 0x26f   :  { %v336_v36 = vpop.f32.mrf.mxu0 }
 0x270   :  { %v559_v54 = vmul.f32 0.25, %v336_v36 }
 0x271   :  { %v1746_v37 = vpop.f32.mrf.mxu0 }
 0x272   :  { %v1753_v38 = vpop.f32.mrf.mxu1  ;;  %v2376_v61 = vpack.c.bf16 %v559_v54, %v558_v57 }
 0x273   :  { %v445_v39 = vpop.f32.mrf.mxu0 }
 0x274   :  { %v396_v40 = vpop.f32.mrf.mxu1 }
 0x275   :  { %v1761_v41 = vpop.f32.mrf.mxu0 }
 0x276   :  { %v1754_v42 = vpop.f32.mrf.mxu1 }
 0x277   :  { %v2365_v44 = vpack.c.bf16 %v1754_v42, %v1753_v38  ;;  %v448_v45 = vpop.f32.mrf.mxu0 }
 0x278   :  { %v2367_v46 = vpack.c.bf16 %v448_v45, %v445_v39  ;;  %v399_v47 = vpop.f32.mrf.mxu1 }
 0x279   :  { %v561_v48 = vpack.c.bf16 %v399_v47, %v396_v40  ;;  %v1762_v49 = vpop.f32.mrf.mxu0 }
 0x27a   :  { %v1769_v50 = vpop.f32.mrf.mxu1  ;;  %v615_v51 = vsel %vm567_vm2, %v2367_v46, 0 }
 0x27b   :  { %v572_v52 = vsel %vm567_vm2, %v561_v48, 0  ;;  %v551_v53 = vpop.f32.mrf.mxu0  ;;  %1786 = vmatpush3.bf16.xpose.msra.mxu0 %v615_v51 }
 0x27c   :  { %v502_v55 = vpop.f32.mrf.mxu1  ;;  %1780 = vmatpush3.bf16.xpose.msra.mxu1 %v572_v52  ;;  %1797 = vmatprep.subr.bf16.mxu0 %v2187_v43 }
 0x27d   :  { %v1777_v56 = vpop.f32.mrf.mxu0  ;;  %1791 = vmatprep.subr.bf16.mxu1 %v2187_v43 }
 0x27e   :  { %v1770_v58 = vpop.f32.mrf.mxu1 }
 0x27f   :  { %v2374_v59 = vpack.c.bf16 %v1770_v58, %v1769_v50  ;;  %v554_v60 = vpop.f32.mrf.mxu0 }
 0x280   :  { %v2378_v62 = vpack.c.bf16 %v554_v60, %v551_v53  ;;  %v505_v63 = vpop.f32.mrf.mxu1 }
 0x281   :  { %v2380_v0 = vpack.c.bf16 %v505_v63, %v502_v55  ;;  %v1778_v1 = vpop.f32.mrf.mxu0 }
 0x282   :  { %1788 = vmatmul.mubr.msk.bf16.vlgmr.msra.gmra.mxu0 %vm567_vm2, %v2376_v61  ;;  %v685_v2 = vsel %vm683_vm3, %v2378_v62, 0 }
 0x283   :  { %1782 = vmatmul.mubr.msk.bf16.vlgmr.msra.gmra.mxu1 %vm567_vm2, %v2376_v61  ;;  %1798 = vmatpush3.bf16.msra.mxu0 %v2380_v0 }
 0x284   :  { %1792 = vmatpush3.bf16.msra.mxu1 %v685_v2  ;;  %1793 = vmatprep.mubr.msk.bf16.mxu1 %vm2188_vm1, %v2187_v43 }
 0x285   :  { %1799 = vmatprep.mubr.msk.bf16.mxu0 %vm2188_vm1, %v2187_v43  ;;  %1803 = vmatprep.subr.bf16.mxu1 %v2187_v43 }
 0x286   :  { %1809 = vmatprep.subr.bf16.mxu0 %v2187_v43 }
 0x342   :  { %v651_v3 = vpop.f32.mrf.mxu0 }
 0x343   :  { %v661_v4 = vsel %vm660_vm4, %v651_v3, -inf  ;;  %v608_v5 = vpop.f32.mrf.mxu1 }
 0x344   :  { %662 = vmax.xlane.f32.xlu1 %v661_v4  ;;  %v1789_v6 = vpop.f32.mrf.mxu0  ;;  %v657_v7 = vsel %vm567_vm2, %v608_v5, -inf }
 0x345   :  { %658 = vmax.xlane.f32.xlu0 %v657_v7  ;;  %v1783_v8 = vpop.f32.mrf.mxu1 }
 0x346   :  { %v654_v9 = vpop.f32.mrf.mxu0 }
 0x347   :  { %v611_v10 = vpop.f32.mrf.mxu1 }
 0x348   :  { %v1790_v11 = vpop.f32.mrf.mxu0 }
 0x349   :  { %v1784_v12 = vpop.f32.mrf.mxu1 }
 0x355   :  { %828 = vrot.lane.b32.xlu1 %v2367_v46, %s2189_s6 }
 0x359   :  { %776 = vrot.lane.b32.xlu1 %v2376_v61, %s2189_s6 }
 0x35b   :  { %779 = vrot.lane.b32.xlu0 %v561_v48, %s2189_s6 }
 0x3cd   :  { %v663_v13 = vpop.xlane.xlu1 %662 }
 0x3ce   :  { %v659_v14 = vpop.xlane.xlu0 %658 }
 0x3cf   :  { %v664_v15 = vmax.f32 %v659_v14, %v663_v13  ;;  %v1142_v13 = vrot.slane %v2367_v46, 4  ;;  %v1923_v46 = vld [vmem:[%s2538_s9 + $0x8] sm:$0xff]  }
 0x3d1   :  { %v665_v18 = vsub.f32 %v608_v5, %v664_v15  ;;  %v668_v19 = vsub.f32 %v651_v3, %v664_v15  ;;  %v829_v22 = vpop.permute.xlu1 %828  ;;  %v1922_v3 = vld [vmem:[%s2538_s9] sm:$0xff]  }
 0x3d2   :  { %v780_v25 = vpop.permute.xlu0 %779  ;;  %v831_v17 = vsel %vm567_vm2, %v829_v22, 0 }
 0x3d3   :  { %v666_v20 = vmul.f32 1.442695, %v665_v18  ;;  %v669_v16 = vmul.f32 1.442695, %v668_v19  ;;  %v785_v28 = vsel %vm567_vm2, %v780_v25, 0  ;;  %v1144_v18 = vsel %vm567_vm2, %v1142_v13, 0 }
 0x3d4   :  { %v1095_v19 = vrot.slane %v2376_v61, 4 }
 0x3d5   :  { %1938 = vpow2.f32 %v666_v20  ;;  %v777_v29 = vpop.permute.xlu1 %776 }
 0x3d6   :  { %1940 = vpow2.f32 %v669_v16 }
 0x3e2   :  { %v1939_v21 = vpop.eup %1938 }
 0x3e3   :  { %v1941_v23 = vpop.eup %1940  ;;  %v678_v24 = vpack.c.bf16 %v1939_v21, %v1939_v21  ;;  %v671_v52 = vsel %vm567_vm2, %v1939_v21, 0.0 }
 0x3e4   :  { %v679_v27 = vpack.c.bf16 %v1941_v23, %v1941_v23  ;;  %v674_v51 = vsel %vm660_vm4, %v1941_v23, 0.0 }
 0x3e5   :  { %1800 = vmatmul.mubr.msk.bf16.vlgmr.msra.gmra.mxu0 %vm567_vm2, %v678_v24 }
 0x3e6   :  { %1794 = vmatmul.mubr.msk.bf16.vlgmr.msra.gmra.mxu1 %vm660_vm4, %v679_v27  ;;  %1810 = vmatpush3.bf16.xpose.msra.mxu0 %v831_v17 }
 0x3e7   :  { %1804 = vmatpush3.bf16.xpose.msra.mxu1 %v785_v28  ;;  %1805 = vmatprep.mubr.msk.bf16.mxu1 %vm2188_vm1, %v2187_v43 }
 0x3e8   :  { %1811 = vmatprep.mubr.msk.bf16.mxu0 %vm2188_vm1, %v2187_v43  ;;  %1821 = vmatprep.subr.bf16.mxu0 %v2187_v43 }
 0x3e9   :  { %1815 = vmatprep.subr.bf16.mxu1 %v2187_v43 }
 0x3ed   :  { %1812 = vmatmul.mubr.msk.bf16.vlgmr.msra.gmra.mxu0 %vm567_vm2, %v777_v29 }
 0x3ee   :  { %1806 = vmatmul.mubr.msk.bf16.vlgmr.msra.gmra.mxu1 %vm567_vm2, %v777_v29  ;;  %1823 = vmatprep.mubr.msk.bf16.mxu0 %vm2188_vm1, %v2187_v43 }
 0x3ef   :  { %1817 = vmatprep.mubr.msk.bf16.mxu1 %vm2188_vm1, %v2187_v43 }
 0x4a5   :  { %v764_v30 = vpop.f32.mrf.mxu0 }
 0x4a6   :  { %v721_v26 = vpop.f32.mrf.mxu1 }
 0x4a7   :  { %v765_v31 = vadd.f32 %v764_v30, %v721_v26  ;;  %v1801_v32 = vpop.f32.mrf.mxu0 }
 0x4a8   :  { %v1795_v33 = vpop.f32.mrf.mxu1  ;;  %v1100_v32 = vsel %vm567_vm2, %v2365_v44, 0 }
 0x4a9   :  { %v767_v34 = vpop.f32.mrf.mxu0  ;;  %v1208_v33 = vrot.slane %v2378_v62, 4 }
 0x4aa   :  { %v724_v35 = vpop.f32.mrf.mxu1 }
 0x4ab   :  { %v1802_v36 = vpop.f32.mrf.mxu0  ;;  %v1213_v34 = vsel %vm683_vm3, %v1208_v33, 0 }
 0x4ac   :  { %v1796_v37 = vpop.f32.mrf.mxu1 }
 0x4ad   :  { %v867_v38 = vpop.f32.mrf.mxu0 }
 0x4ae   :  { %v821_v39 = vpop.f32.mrf.mxu1  ;;  %v876_v40 = vsel %vm660_vm4, %v867_v38, -inf }
 0x4af   :  { %877 = vmax.xlane.f32.xlu0 %v876_v40  ;;  %v1813_v41 = vpop.f32.mrf.mxu0  ;;  %v873_v42 = vsel %vm567_vm2, %v821_v39, -inf }
 0x4b0   :  { %874 = vmax.xlane.f32.xlu1 %v873_v42  ;;  %v1807_v45 = vpop.f32.mrf.mxu1 }
 0x4b1   :  { %v870_v47 = vpop.f32.mrf.mxu0 }
 0x4b2   :  { %v824_v48 = vpop.f32.mrf.mxu1 }
 0x4b3   :  { %v1814_v49 = vpop.f32.mrf.mxu0 }
 0x4b4   :  { %v1808_v50 = vpop.f32.mrf.mxu1 }
 0x4c1   :  { %945 = vrot.lane.b32.xlu1 %v2380_v0, %s2189_s6 }
 0x4c5   :  { %896 = vrot.lane.b32.xlu0 %v2378_v62, %s2189_s6 }
 0x4e4   :  { %675 = vadd.xlane.f32.xlu0 %v674_v51 }
 0x4e5   :  { %672 = vadd.xlane.f32.xlu1 %v671_v52 }
 0x538   :  { %v878_v53 = vpop.xlane.xlu0 %877 }
 0x539   :  { %v875_v54 = vpop.xlane.xlu1 %874 }
 0x53a   :  { %v879_v55 = vmax.f32 %v875_v54, %v878_v53 }
 0x53c   :  { %v880_v56 = vsub.f32 %v821_v39, %v879_v55  ;;  %v883_v57 = vsub.f32 %v867_v38, %v879_v55  ;;  %v897_v58 = vpop.permute.xlu0 %896 }
 0x53d   :  { %v902_v60 = vsel %vm683_vm3, %v897_v58, 0  ;;  %v946_v63 = vpop.permute.xlu1 %945 }
 0x53e   :  { %v881_v1 = vmul.f32 1.442695, %v880_v56  ;;  %v884_v0 = vmul.f32 1.442695, %v883_v57  ;;  %1822 = vmatpush3.bf16.msra.mxu0 %v946_v63  ;;  %1816 = vmatpush3.bf16.msra.mxu1 %v902_v60 }
 0x53f   :  { %1833 = vmatprep.subr.bf16.mxu0 %v2187_v43  ;;  %1827 = vmatprep.subr.bf16.mxu1 %v2187_v43 }
 0x540   :  { %1942 = vpow2.f32 %v881_v1 }
 0x541   :  { %1944 = vpow2.f32 %v884_v0 }
 0x54d   :  { %v1943_v2 = vpop.eup %1942 }
 0x54e   :  { %v1945_v4 = vpop.eup %1944  ;;  %v886_v5 = vsel %vm567_vm2, %v1943_v2, 0.0  ;;  %v893_v6 = vpack.c.bf16 %v1943_v2, %v1943_v2 }
 0x54f   :  { %887 = vadd.xlane.f32.xlu0 %v886_v5  ;;  %v894_v7 = vpack.c.bf16 %v1945_v4, %v1945_v4  ;;  %v889_v8 = vsel %vm660_vm4, %v1945_v4, 0.0 }
 0x550   :  { %1824 = vmatmul.mubr.msk.bf16.vlgmr.msra.gmra.mxu0 %vm567_vm2, %v893_v6 }
 0x551   :  { %1818 = vmatmul.mubr.msk.bf16.vlgmr.msra.gmra.mxu1 %vm660_vm4, %v894_v7  ;;  %1834 = vmatpush3.bf16.msra.mxu0 %v1922_v3 }
 0x552   :  { %1835 = vmatprep.mubr.msk.bf16.mxu0 %vm2188_vm1, %v2187_v43  ;;  %1845 = vmatprep.subr.bf16.mxu0 %v2187_v43 }
 0x553   :  { %890 = vadd.xlane.f32.xlu0 %v889_v8  ;;  %1829 = vmatprep.mubr.msk.bf16.mxu1 %vm2188_vm1, %v2187_v43 }
 0x554   :  { %1828 = vmatpush3.bf16.msra.mxu1 %v1923_v46 }
 0x555   :  { %1839 = vmatprep.subr.bf16.mxu1 %v2187_v43 }
 0x56d   :  { %v676_v9 = vpop.xlane.xlu0 %675 }
 0x56e   :  { %v673_v10 = vpop.xlane.xlu1 %672 }
 0x56f   :  { %v677_v11 = vadd.f32 %v676_v9, %v673_v10 }
 0x571   :  { %1946 = vrcp.f32 %v677_v11 }
 0x57e   :  { %v1947_v12 = vpop.eup %1946 }
 0x57f   :  { %v771_v14 = vmul.f32 %v1947_v12, %v765_v31 }
 0x581   :  { %v772_v15 = vpack.c.bf16 %v771_v14, %v771_v14 }
 0x583   :  { %1836 = vmatmul.mubr.msk.bf16.vlgmr.msra.gmra.mxu0 %vm567_vm2, %v772_v15 }
 0x584   :  { %1846 = vmatpush3.bf16.xpose.msra.mxu0 %v1144_v18  ;;  %1847 = vmatprep.mubr.msk.bf16.mxu0 %vm2188_vm1, %v2187_v43 }
 0x585   :  { %1857 = vmatprep.subr.bf16.mxu0 %v2187_v43 }
 0x58b   :  { %1848 = vmatmul.mubr.msk.bf16.vlgmr.msra.gmra.mxu0 %vm567_vm2, %v1095_v19 }
 0x58c   :  { %1858 = vmatpush3.bf16.msra.mxu0 %v2374_v59  ;;  %1859 = vmatprep.mubr.msk.bf16.mxu0 %vm2188_vm1, %v2187_v43 }
 0x58d   :  { %1869 = vmatprep.subr.bf16.mxu0 %v2187_v43 }
 0x5d8   :  { %v888_v20 = vpop.xlane.xlu0 %887 }
 0x5dc   :  { %v891_v16 = vpop.xlane.xlu0 %890 }
 0x5dd   :  { %v892_v21 = vadd.f32 %v891_v16, %v888_v20 }
 0x5df   :  { %1948 = vrcp.f32 %v892_v21 }
 0x5ec   :  { %v1949_v24 = vpop.eup %1948 }
 0x610   :  { %v985_v61 = vpop.f32.mrf.mxu0 }
 0x611   :  { %v938_v22 = vpop.f32.mrf.mxu1 }
 0x612   :  { %v986_v23 = vadd.f32 %v985_v61, %v938_v22  ;;  %v1825_v25 = vpop.f32.mrf.mxu0 }
 0x613   :  { %v1819_v27 = vpop.f32.mrf.mxu1 }
 0x614   :  { %v992_v17 = vmul.f32 %v1949_v24, %v986_v23  ;;  %v988_v28 = vpop.f32.mrf.mxu0 }
 0x615   :  { %v941_v29 = vpop.f32.mrf.mxu1 }
 0x616   :  { %v993_v30 = vpack.c.bf16 %v992_v17, %v992_v17  ;;  %v1826_v26 = vpop.f32.mrf.mxu0 }
 0x617   :  { %v1820_v31 = vpop.f32.mrf.mxu1 }
 0x618   :  { %1830 = vmatmul.mubr.msk.bf16.vlgmr.msra.gmra.mxu1 %vm567_vm2, %v993_v30 }
 0x619   :  { %1840 = vmatpush3.bf16.xpose.msra.mxu1 %v1100_v32  ;;  %1841 = vmatprep.mubr.msk.bf16.mxu1 %vm2188_vm1, %v2187_v43 }
 0x61a   :  { %1851 = vmatprep.subr.bf16.mxu1 %v2187_v43 }
 0x620   :  { %1842 = vmatmul.mubr.msk.bf16.vlgmr.msra.gmra.mxu1 %vm567_vm2, %v1095_v19 }
 0x621   :  { %1852 = vmatpush3.bf16.msra.mxu1 %v1213_v34  ;;  %1853 = vmatprep.mubr.msk.bf16.mxu1 %vm2188_vm1, %v2187_v43 }
 0x622   :  { %1863 = vmatprep.subr.bf16.mxu1 %v2187_v43 }
 0x643   :  { %v1088_v35 = vpop.f32.mrf.mxu0 }
 0x645   :  { %v1837_v36 = vpop.f32.mrf.mxu0 }
 0x647   :  { %v1091_v37 = vpop.f32.mrf.mxu0 }
 0x649   :  { %v1838_v38 = vpop.f32.mrf.mxu0 }
 0x64b   :  { %v1180_v39 = vpop.f32.mrf.mxu0 }
 0x64c   :  { %v1189_v40 = vsel %vm660_vm4, %v1180_v39, -inf }
 0x64d   :  { %1190 = vmax.xlane.f32.xlu0 %v1189_v40  ;;  %v1849_v41 = vpop.f32.mrf.mxu0 }
 0x64f   :  { %v1183_v42 = vpop.f32.mrf.mxu0 }
 0x651   :  { %v1850_v45 = vpop.f32.mrf.mxu0 }
 0x663   :  { %1354 = vrot.lane.b32.xlu0 %v1142_v13, %s2189_s6 }
 0x6d6   :  { %v1191_v57 = vpop.xlane.xlu0 %1190 }
 0x6d8   :  { %v1039_v47 = vpop.f32.mrf.mxu1 }
 0x6d9   :  { %v1089_v48 = vadd.f32 %v1088_v35, %v1039_v47 }
 0x6da   :  { %v1831_v49 = vpop.f32.mrf.mxu1  ;;  %v1355_v4 = vpop.permute.xlu0 %1354 }
 0x6db   :  { %1094 = vst.msk [vmem:[#allocation17] sm:$0xff] %vm159_vm0, %v1089_v48  ;;  %v1357_v9 = vsel %vm567_vm2, %v1355_v4, 0 }
 0x6dc   :  { %v1042_v50 = vpop.f32.mrf.mxu1 }
 0x6de   :  { %v1832_v51 = vpop.f32.mrf.mxu1 }
 0x6e0   :  { %v1136_v52 = vpop.f32.mrf.mxu1 }
 0x6e1   :  { %v1186_v53 = vsel %vm567_vm2, %v1136_v52, -inf }
 0x6e2   :  { %1187 = vmax.xlane.f32.xlu1 %v1186_v53  ;;  %v1843_v54 = vpop.f32.mrf.mxu1 }
 0x6e3   :  { %v1925_v54 = vld [vmem:[%s2538_s9 + $0x8] sm:$0xff]  }
 0x6e4   :  { %v1139_v55 = vpop.f32.mrf.mxu1 }
 0x6e6   :  { %v1844_v56 = vpop.f32.mrf.mxu1 }
 0x6f3   :  { %1306 = vrot.lane.b32.xlu1 %v2365_v44, %s2189_s6 }
 0x6f7   :  { %1303 = vrot.lane.b32.xlu1 %v1095_v19, %s2189_s6 }
 0x76b   :  { %v1188_v58 = vpop.xlane.xlu1 %1187 }
 0x76c   :  { %v1192_v60 = vmax.f32 %v1188_v58, %v1191_v57 }
 0x76e   :  { %v1193_v63 = vsub.f32 %v1136_v52, %v1192_v60  ;;  %v1196_v1 = vsub.f32 %v1180_v39, %v1192_v60 }
 0x76f   :  { %v1307_v6 = vpop.permute.xlu1 %1306 }
 0x770   :  { %v1194_v0 = vmul.f32 1.442695, %v1193_v63  ;;  %v1197_v2 = vmul.f32 1.442695, %v1196_v1  ;;  %v1312_v44 = vsel %vm567_vm2, %v1307_v6, 0 }
 0x772   :  { %1950 = vpow2.f32 %v1194_v0 }
 0x773   :  { %1952 = vpow2.f32 %v1197_v2  ;;  %v1304_v10 = vpop.permute.xlu1 %1303 }
 0x77f   :  { %v1951_v3 = vpop.eup %1950 }
 0x780   :  { %v1953_v5 = vpop.eup %1952  ;;  %v1206_v7 = vpack.c.bf16 %v1951_v3, %v1951_v3  ;;  %v1199_v30 = vsel %vm567_vm2, %v1951_v3, 0.0 }
 0x781   :  { %v1207_v8 = vpack.c.bf16 %v1953_v5, %v1953_v5  ;;  %v1202_v29 = vsel %vm660_vm4, %v1953_v5, 0.0 }
 0x782   :  { %1860 = vmatmul.mubr.msk.bf16.vlgmr.msra.gmra.mxu0 %vm567_vm2, %v1206_v7 }
 0x783   :  { %1854 = vmatmul.mubr.msk.bf16.vlgmr.msra.gmra.mxu1 %vm660_vm4, %v1207_v8  ;;  %1870 = vmatpush3.bf16.xpose.msra.mxu0 %v1357_v9 }
 0x784   :  { %1864 = vmatpush3.bf16.xpose.msra.mxu1 %v1312_v44  ;;  %1865 = vmatprep.mubr.msk.bf16.mxu1 %vm2188_vm1, %v2187_v43 }
 0x785   :  { %1871 = vmatprep.mubr.msk.bf16.mxu0 %vm2188_vm1, %v2187_v43  ;;  %1881 = vmatprep.subr.bf16.mxu0 %v2187_v43 }
 0x786   :  { %1875 = vmatprep.subr.bf16.mxu1 %v2187_v43 }
 0x78a   :  { %1872 = vmatmul.mubr.msk.bf16.vlgmr.msra.gmra.mxu0 %vm567_vm2, %v1304_v10 }
 0x78b   :  { %1866 = vmatmul.mubr.msk.bf16.vlgmr.msra.gmra.mxu1 %vm567_vm2, %v1304_v10  ;;  %1883 = vmatprep.mubr.msk.bf16.mxu0 %vm2188_vm1, %v2187_v43 }
 0x78c   :  { %1877 = vmatprep.mubr.msk.bf16.mxu1 %vm2188_vm1, %v2187_v43 }
 0x842   :  { %v1292_v11 = vpop.f32.mrf.mxu0 }
 0x843   :  { %v1249_v12 = vpop.f32.mrf.mxu1 }
 0x844   :  { %v1293_v13 = vadd.f32 %v1292_v11, %v1249_v12  ;;  %v1861_v14 = vpop.f32.mrf.mxu0 }
 0x845   :  { %v1855_v15 = vpop.f32.mrf.mxu1 }
 0x846   :  { %v1295_v18 = vpop.f32.mrf.mxu0 }
 0x847   :  { %v1252_v19 = vpop.f32.mrf.mxu1 }
 0x848   :  { %v1862_v46 = vpop.f32.mrf.mxu0 }
 0x849   :  { %v1856_v20 = vpop.f32.mrf.mxu1 }
 0x84a   :  { %v1393_v16 = vpop.f32.mrf.mxu0 }
 0x84b   :  { %v1348_v21 = vpop.f32.mrf.mxu1  ;;  %v1402_v61 = vsel %vm660_vm4, %v1393_v16, -inf }
 0x84c   :  { %1403 = vmax.xlane.f32.xlu0 %v1402_v61  ;;  %v1873_v22 = vpop.f32.mrf.mxu0  ;;  %v1399_v23 = vsel %vm567_vm2, %v1348_v21, -inf }
 0x84d   :  { %1400 = vmax.xlane.f32.xlu1 %v1399_v23  ;;  %v1867_v25 = vpop.f32.mrf.mxu1 }
 0x84e   :  { %v1396_v24 = vpop.f32.mrf.mxu0 }
 0x84f   :  { %v1351_v27 = vpop.f32.mrf.mxu1 }
 0x850   :  { %v1874_v17 = vpop.f32.mrf.mxu0 }
 0x851   :  { %v1868_v28 = vpop.f32.mrf.mxu1 }
 0x85e   :  { %1470 = vrot.lane.b32.xlu1 %v2374_v59, %s2189_s6 }
 0x862   :  { %1421 = vrot.lane.b32.xlu0 %v1208_v33, %s2189_s6  ;;  %v1924_v33 = vld [vmem:[%s2538_s9] sm:$0xff]   ;;  %s2190_s9 = smov [#allocation17]  }
 0x863   :  { %s1625_s26 = sshll.u32 %s2190_s9, 4  ;;  %s1626_s26 = int_to_ptr.vmem [resolvable:$true] %s1625_s26 }
 0x864   :  { %s2142_s27 = scalar_lea.vmem %s1626_s26, 256  ;;  %p2147_p4 = scmp.lt.s32.totalorder %s1626_s26, %s1626_s26 }
 0x865   :  { %p2143_p3 = scmp.ne.s32.totalorder %s1626_s26, %s2142_s27  ;;  %p2148_p5 = scmp.lt.s32.totalorder %s2142_s27, %s2142_s27 }
 0x867   :  { %p2149_p6 = por %p2148_p5, %p2147_p4 }
 0x869   :  { %p2150_p7 = pnand %p2149_p6, %p2143_p3 }
 0x881   :  { %1203 = vadd.xlane.f32.xlu0 %v1202_v29 }
 0x882   :  { %1200 = vadd.xlane.f32.xlu1 %v1199_v30 }
 0x8d5   :  { %v1404_v26 = vpop.xlane.xlu0 %1403 }
 0x8d6   :  { %v1401_v31 = vpop.xlane.xlu1 %1400 }
 0x8d7   :  { %v1405_v32 = vmax.f32 %v1401_v31, %v1404_v26 }
 0x8d9   :  { %v1406_v34 = vsub.f32 %v1348_v21, %v1405_v32  ;;  %v1409_v35 = vsub.f32 %v1393_v16, %v1405_v32  ;;  %v1422_v36 = vpop.permute.xlu0 %1421 }
 0x8da   :  { %v1427_v37 = vsel %vm683_vm3, %v1422_v36, 0  ;;  %v1471_v38 = vpop.permute.xlu1 %1470 }
 0x8db   :  { %v1407_v59 = vmul.f32 1.442695, %v1406_v34  ;;  %v1410_v39 = vmul.f32 1.442695, %v1409_v35  ;;  %1882 = vmatpush3.bf16.msra.mxu0 %v1471_v38  ;;  %1876 = vmatpush3.bf16.msra.mxu1 %v1427_v37 }
 0x8dc   :  { %1893 = vmatprep.subr.bf16.mxu0 %v2187_v43  ;;  %1887 = vmatprep.subr.bf16.mxu1 %v2187_v43 }
 0x8dd   :  { %1954 = vpow2.f32 %v1407_v59 }
 0x8de   :  { %1956 = vpow2.f32 %v1410_v39 }
 0x8ea   :  { %v1955_v62 = vpop.eup %1954 }
 0x8eb   :  { %v1957_v40 = vpop.eup %1956  ;;  %v1412_v41 = vsel %vm567_vm2, %v1955_v62, 0.0  ;;  %v1419_v42 = vpack.c.bf16 %v1955_v62, %v1955_v62 }
 0x8ec   :  { %v1415_v45 = vsel %vm660_vm4, %v1957_v40, 0.0  ;;  %1413 = vadd.xlane.f32.xlu0 %v1412_v41  ;;  %v1420_v47 = vpack.c.bf16 %v1957_v40, %v1957_v40 }
 0x8ed   :  { %1416 = vadd.xlane.f32.xlu1 %v1415_v45  ;;  %1884 = vmatmul.mubr.msk.bf16.vlgmr.msra.gmra.mxu0 %vm567_vm2, %v1419_v42 }
 0x8ee   :  { %1878 = vmatmul.mubr.msk.bf16.vlgmr.msra.gmra.mxu1 %vm660_vm4, %v1420_v47  ;;  %1894 = vmatpush3.bf16.msra.mxu0 %v1924_v33 }
 0x8ef   :  { %1895 = vmatprep.mubr.msk.bf16.mxu0 %vm2188_vm1, %v2187_v43  ;;  %1889 = vmatprep.mubr.msk.bf16.mxu1 %vm2188_vm1, %v2187_v43 }
 0x8f0   :  { %1888 = vmatpush3.bf16.msra.mxu1 %v1925_v54 }
 0x90a   :  { %v1204_v48 = vpop.xlane.xlu0 %1203 }
 0x90b   :  { %v1201_v49 = vpop.xlane.xlu1 %1200 }
 0x90c   :  { %v1205_v50 = vadd.f32 %v1204_v48, %v1201_v49 }
 0x90e   :  { %1958 = vrcp.f32 %v1205_v50 }
 0x91b   :  { %v1959_v51 = vpop.eup %1958 }
 0x91c   :  { %v1299_v52 = vmul.f32 %v1959_v51, %v1293_v13 }
 0x91e   :  { %v1300_v53 = vpack.c.bf16 %v1299_v52, %v1299_v52 }
 0x920   :  { %1896 = vmatmul.mubr.msk.bf16.vlgmr.msra.gmra.mxu0 %vm567_vm2, %v1300_v53 }
 0x975   :  { %v1414_v55 = vpop.xlane.xlu0 %1413 }
 0x976   :  { %v1417_v56 = vpop.xlane.xlu1 %1416 }
 0x977   :  { %v1418_v57 = vadd.f32 %v1417_v56, %v1414_v55 }
 0x979   :  { %1960 = vrcp.f32 %v1418_v57 }
 0x986   :  { %v1961_v1 = vpop.eup %1960 }
 0x9ad   :  { %v1510_v58 = vpop.f32.mrf.mxu0 }
 0x9ae   :  { %v1463_v43 = vpop.f32.mrf.mxu1 }
 0x9af   :  { %v1511_v60 = vadd.f32 %v1510_v58, %v1463_v43  ;;  %v1885_v63 = vpop.f32.mrf.mxu0 }
 0x9b0   :  { %v1879_v0 = vpop.f32.mrf.mxu1 }
 0x9b1   :  { %v1517_v2 = vmul.f32 %v1961_v1, %v1511_v60  ;;  %v1513_v3 = vpop.f32.mrf.mxu0 }
 0x9b2   :  { %v1466_v4 = vpop.f32.mrf.mxu1 }
 0x9b3   :  { %v1518_v5 = vpack.c.bf16 %v1517_v2, %v1517_v2  ;;  %v1886_v6 = vpop.f32.mrf.mxu0 }
 0x9b4   :  { %v1880_v7 = vpop.f32.mrf.mxu1 }
 0x9b5   :  { %1890 = vmatmul.mubr.msk.bf16.vlgmr.msra.gmra.mxu1 %vm567_vm2, %v1518_v5 }
 0x9e0   :  { %v1613_v8 = vpop.f32.mrf.mxu0 }
 0x9e2   :  { %v1897_v9 = vpop.f32.mrf.mxu0 }
 0x9e4   :  { %v1616_v44 = vpop.f32.mrf.mxu0 }
 0x9e6   :  { %v1898_v10 = vpop.f32.mrf.mxu0 }
 0xa75   :  { %v1564_v11 = vpop.f32.mrf.mxu1 }
 0xa76   :  { %v1614_v12 = vadd.f32 %v1613_v8, %v1564_v11 }
 0xa77   :  { %v1891_v13 = vpop.f32.mrf.mxu1 }
 0xa78   :  { %1619 = vst.msk [vmem:[#allocation17 + $0x8] sm:$0xff] %vm159_vm0, %v1614_v12 }
 0xa79   :  { %v1567_v14 = vpop.f32.mrf.mxu1 }
 0xa7a   :  { %2153 = shalt.err (!%p2150_p7)
}
 0xa7b   :  { %1631 = dma.vmem_to_hbm [thread:$0]  %s1626_s26, 256, %s2539_s10, [#allocation4], %s2176_s18, %s2176_s18, %s2177_s19   ;;  %v1892_v15 = vpop.f32.mrf.mxu1 }
 0xa7c   :  { %2172 = dma.done.wait [#allocation4], 256  }
 0xa7d   :  { %2173 = vsyncadd [#allocation4], 4294967040 }
 0xa7e   :  { %1635 = vsyncpa [#allocation3], 1 }
 0xa7f   :  { %1636 = vsyncpa [#allocation6], 1 }
 0xa80   :  { %1637 = vsyncpa [#allocation9], 1 }
 0xa81   :  { %1638 = vsyncpa [#allocation12], 1 }
 0xa82   :  { %1639 = vsyncpa [#allocation15], 1 }
 0xa83   :  { %1640 = vsyncpa [#allocation4], 1 }

</bundles_post_ra>
